<compile_context>
chip_gen: v7x
topology: tpu7x:2x2x1
jax: 0.10.0
libtpu: 0.0.40
codegen_flags: <defaults>
</compile_context>

<pallas_src>
import functools

import jax
import jax.numpy as jnp
from jax.experimental import pallas as pl
from jax.experimental.pallas import tpu as pltpu


def _temporal_attn_kernel(x_ref, pos_ref, wqkv_ref, lw_ref, lb_ref,
                          hmask_ref, bias_ref, seg_ref, segt_ref, o_ref,
                          *, n_heads, t, residual):
    rows, d = x_ref.shape                      # rows = node_block * T
    nb = rows // t
    ht = n_heads * t

    # ---- temporal inputs: x + position embeddings (pos kept (T, D); broadcast over nodes)
    x3 = x_ref[...].reshape(nb, t, d)
    t_in3 = x3 + pos_ref[...][None]
    t_in = t_in3.reshape(rows, d)

    # ---- fused Q/K/V projection (1/sqrt(T) already folded into the Q columns of wqkv)
    qkv = jnp.dot(t_in, wqkv_ref[...], preferred_element_type=jnp.float32)   # (rows, 3D)
    q3 = qkv[:, :d].reshape(nb, t, d)
    k3 = qkv[:, d:2 * d].reshape(nb, t, d)
    v3 = qkv[:, 2 * d:].reshape(nb, t, d)

    # ---- block-diagonal key/value slabs: one sublane copy of K/V per head, masked to
    #      that head's feature columns (hmask[h*T+tq, i] = [i // dh == h]).
    hmask = hmask_ref[...]                                                    # (H*T, D)
    k_bd = jnp.concatenate([k3] * n_heads, axis=1) * hmask[None]              # (nb, H*T, D)
    v_bd = jnp.concatenate([v3] * n_heads, axis=1) * hmask[None]              # (nb, H*T, D)

    # ---- lane-packed scores: S[n, tp, h*T+tq] = <Q_h[n,tp], K_h[n,tq]>  (no garbage lanes)
    s = jnp.einsum('ntd,ncd->ntc', q3, k_bd,
                   preferred_element_type=jnp.float32)                        # (nb, T, H*T)
    s = s + bias_ref[...][None]                                               # causal bias
    m = jnp.max(s, axis=-1, keepdims=True)                                    # row-global max
    p = jnp.exp(s - m)                                                        # masked -> 0

    # ---- per-head softmax denominators via segment-sum matmuls (heads never mixed)
    p2 = p.reshape(rows, ht)
    denom = jnp.dot(p2, seg_ref[...], preferred_element_type=jnp.float32)     # (rows, H)
    denom = jnp.maximum(denom, jnp.float32(1e-30))
    recip = pl.reciprocal(denom, approx=True)
    p2 = p2 * jnp.dot(recip, segt_ref[...], preferred_element_type=jnp.float32)
    p = p2.reshape(nb, t, ht)

    # ---- attention output lands directly in (node, time, feature) layout
    attn = jnp.einsum('ntc,ncd->ntd', p, v_bd,
                      preferred_element_type=jnp.float32).reshape(rows, d)

    # ---- feedforward: relu(lin(attn)) + attn, optional temporal-input residual
    ff = jnp.dot(attn, lw_ref[...], preferred_element_type=jnp.float32) + lb_ref[...]
    out = jnp.maximum(ff, 0.0) + attn
    if residual:
        out = out + t_in
    o_ref[...] = out.astype(o_ref.dtype)


def _pick_node_block(n_nodes, t, d, n_heads, in_bytes, vmem_budget, num_cores):
    """VMEM-budgeted node batch size (rows/step capped near the MXU sweet spot)."""
    ht = n_heads * t
    fixed = 4 * (3 * d * d + d * d + d + t * d + ht * d + t * ht + 2 * ht * n_heads)
    per_node = (2 * 2 * t * d * in_bytes          # double-buffered in/out blocks
                + 4 * t * d * 9                   # t_in, qkv(3), q/k/v, attn, ff (f32)
                + 4 * 3 * ht * d                  # k_bd, v_bd (+ tiling temp)    (f32)
                + 4 * 3 * t * ht)                 # scores, probs, temp           (f32)
    nb = (vmem_budget - fixed) // max(per_node, 1)
    nb = max(1, min(n_nodes, nb, max(1, 512 // t)))
    if num_cores > 1 and nb >= n_nodes and n_nodes >= 2:
        nb = (n_nodes + 1) // 2                   # let dual-TC parts split the grid
    return int(nb)


def temporal_attention_layer(inputs, pos_emb, wq, wk, wv, lin_w, lin_b,
                             *, n_heads, residual, node_block=None):
    """inputs: (N, T, D).  lin_w stored as (in, out) so y = x @ lin_w + lin_b."""
    N, T, D = inputs.shape
    assert D % n_heads == 0, "n_heads must divide input_dim"
    dh = D // n_heads
    ht = n_heads * T
    in_bytes = inputs.dtype.itemsize

    # --- hardware-aware sizing (safe fallbacks when introspection is unavailable) ----
    try:
        vmem_cap = int(pltpu.get_tpu_info().vmem_capacity_bytes)
    except Exception:
        vmem_cap = 64 << 20                       # v7x-safe default
    vmem_limit = int(min(vmem_cap * 7 // 8, 112 << 20))
    try:
        num_cores = int(getattr(jax.devices()[0], "num_cores", 1))
    except Exception:
        num_cores = 1

    if node_block is None:
        node_block = _pick_node_block(N, T, D, n_heads, in_bytes,
                                      vmem_budget=vmem_cap // 3,
                                      num_cores=num_cores)
    node_block = max(1, min(int(node_block), N))
    grid_n = pl.cdiv(N, node_block)
    n_pad = grid_n * node_block
    rows = node_block * T

    x = inputs if n_pad == N else jnp.pad(inputs, ((0, n_pad - N), (0, 0), (0, 0)))
    x2 = x.reshape(n_pad * T, D)

    f32 = jnp.float32
    scale = 1.0 / float(T) ** 0.5
    w_qkv = jnp.concatenate([wq * scale, wk, wv], axis=1)          # (D, 3D), scale in Q
    lin_b2 = lin_b.reshape(1, D)

    # constant helper matrices (tiny, single-buffered)
    head_of_col = jnp.arange(D, dtype=jnp.int32) // dh                          # (D,)
    head_of_key = jnp.arange(ht, dtype=jnp.int32) // T                          # (H*T,)
    head_mask = (head_of_key[:, None] == head_of_col[None, :]).astype(f32)      # (H*T, D)
    seg = (head_of_key[:, None] ==
           jnp.arange(n_heads, dtype=jnp.int32)[None, :]).astype(f32)           # (H*T, H)
    seg_t = seg.T                                                                # (H, H*T)
    tq = jnp.arange(ht, dtype=jnp.int32) % T
    tp = jnp.arange(T, dtype=jnp.int32)
    neg = jnp.float32(-2.0 ** 32 + 1.0)            # matches torch.where(mask == 0, ...)
    causal_bias = jnp.where(tq[None, :] <= tp[:, None], 0.0, neg).astype(f32)   # (T, H*T)

    kernel = functools.partial(_temporal_attn_kernel,
                               n_heads=n_heads, t=T, residual=residual)

    def const_spec(shape, buffered):
        if buffered:
            return pl.BlockSpec(shape, lambda i: (0, 0), pipeline_mode=pl.Buffered(1))
        return pl.BlockSpec(shape, lambda i: (0, 0))

    def run(use_buffered):
        in_specs = [
            pl.BlockSpec((rows, D), lambda i: (i, 0)),       # node batch of inputs
            const_spec((T, D), use_buffered),                # position embeddings
            const_spec((D, 3 * D), use_buffered),            # fused Wqkv (Q pre-scaled)
            const_spec((D, D), use_buffered),                # lin weight (in, out)
            const_spec((1, D), use_buffered),                # lin bias
            const_spec((ht, D), use_buffered),               # per-head column mask
            const_spec((T, ht), use_buffered),               # causal additive bias
            const_spec((ht, n_heads), use_buffered),         # segment-sum matrix
            const_spec((n_heads, ht), use_buffered),         # its transpose
        ]
        return pl.pallas_call(
            kernel,
            out_shape=jax.ShapeDtypeStruct((n_pad * T, D), inputs.dtype),
            grid_spec=pltpu.PrefetchScalarGridSpec(
                num_scalar_prefetch=0,
                grid=(grid_n,),
                in_specs=in_specs,
                out_specs=pl.BlockSpec((rows, D), lambda i: (i, 0)),
            ),
            compiler_params=pltpu.CompilerParams(
                dimension_semantics=("parallel",),
                vmem_limit_bytes=vmem_limit),
        )(x2, pos_emb, w_qkv, lin_w, lin_b2, head_mask, causal_bias, seg, seg_t)

    try:
        out2 = jax.block_until_ready(run(True))
    except Exception:
        # pipeline_mode=pl.Buffered(1) not supported on this jax: fall back cleanly.
        out2 = jax.block_until_ready(run(False))

    return out2.reshape(n_pad, T, D)[:N]


def _reference(inputs, pos_emb, wq, wk, wv, lin_w, lin_b, *, n_heads, residual):
    """Pure-JAX reference replicating the PyTorch forward (eval mode)."""
    N, T, D = inputs.shape
    t_in = inputs + pos_emb[None]                              # (N, T, D)
    q = jnp.einsum("ntd,de->nte", t_in, wq)
    k = jnp.einsum("ntd,de->nte", t_in, wk)
    v = jnp.einsum("ntd,de->nte", t_in, wv)

    def split(x):  # (N, T, D) -> (H*N, T, dh)
        return jnp.concatenate(jnp.split(x, n_heads, axis=2), axis=0)

    q_, k_, v_ = split(q), split(k), split(v)
    s = jnp.einsum("btd,bsd->bts", q_, k_) / (T ** 0.5)
    mask = jnp.tril(jnp.ones((T, T), inputs.dtype))
    s = jnp.where(mask[None] == 0, jnp.float32(-2.0 ** 32 + 1.0), s)
    p = jax.nn.softmax(s, axis=2)
    o = jnp.einsum("bts,bsd->btd", p, v_)
    o = jnp.concatenate(jnp.split(o, n_heads, axis=0), axis=2)  # (N, T, D)
    ff = jnp.maximum(jnp.einsum("ntd,de->nte", o, lin_w) + lin_b, 0.0) + o
    return ff + t_in if residual else ff


def xavier_uniform(key, shape, dtype=jnp.float32):
    fan_in, fan_out = shape[-2], shape[-1]
    a = (6.0 / (fan_in + fan_out)) ** 0.5
    return jax.random.uniform(key, shape, dtype, minval=-a, maxval=a)


if __name__ == "__main__":
    # Small deterministic setup (nodes, num_time_steps, input_dim, n_heads).
    N, T, D, H = 8, 8, 32, 4
    residual = True

    key = jax.random.PRNGKey(0)
    k_x, k_pos, k_q, k_k, k_v, k_lw, k_lb = jax.random.split(key, 7)

    inputs = jax.random.normal(k_x, (N, T, D), jnp.float32)
    pos_emb = xavier_uniform(k_pos, (T, D))
    wq = xavier_uniform(k_q, (D, D))
    wk = xavier_uniform(k_k, (D, D))
    wv = xavier_uniform(k_v, (D, D))
    lin_w = xavier_uniform(k_lw, (D, D))              # stored (in, out)
    lin_b = jax.random.uniform(k_lb, (D,), jnp.float32, minval=-0.1, maxval=0.1)

    out = temporal_attention_layer(inputs, pos_emb, wq, wk, wv, lin_w, lin_b,
                                   n_heads=H, residual=residual)
    out = jax.block_until_ready(out)

    ref = _reference(inputs, pos_emb, wq, wk, wv, lin_w, lin_b,
                     n_heads=H, residual=residual)
    assert out.shape == (N, T, D)
    err = float(jnp.max(jnp.abs(out - ref)))
    # tolerance loosened slightly for pl.reciprocal(approx=True)
    assert jnp.allclose(out, ref, atol=5e-3, rtol=5e-3), f"max abs err {err}"

    print("KERNEL_OK")
</pallas_src>

<mosaic_0001>
module attributes {stable_mosaic.version = 11 : i64} {
  func.func @_temporal_attn_kernel(%arg0: i32, %arg1: memref<64x32xf32, #tpu.memory_space<vmem>>, %arg2: memref<8x32xf32, #tpu.memory_space<vmem>>, %arg3: memref<32x96xf32, #tpu.memory_space<vmem>>, %arg4: memref<32x32xf32, #tpu.memory_space<vmem>>, %arg5: memref<1x32xf32, #tpu.memory_space<vmem>>, %arg6: memref<32x32xf32, #tpu.memory_space<vmem>>, %arg7: memref<8x32xf32, #tpu.memory_space<vmem>>, %arg8: memref<32x4xf32, #tpu.memory_space<vmem>>, %arg9: memref<4x32xf32, #tpu.memory_space<vmem>>, %arg10: memref<64x32xf32, #tpu.memory_space<vmem>>) attributes {dimension_semantics = [#tpu.dimension_semantics<parallel>], iteration_bounds = array<i64: 1>, scalar_prefetch = 0 : i64, scratch_operands = 0 : i64, tpu.core_type = #tpu.core_type<tc>, window_params = [{transform_indices = @transform_0, window_bounds = array<i64: 64, 32>}, {pipeline_mode = #tpu.pipeline_mode<synchronous>, transform_indices = @transform_1, window_bounds = array<i64: 8, 32>}, {pipeline_mode = #tpu.pipeline_mode<synchronous>, transform_indices = @transform_2, window_bounds = array<i64: 32, 96>}, {pipeline_mode = #tpu.pipeline_mode<synchronous>, transform_indices = @transform_3, window_bounds = array<i64: 32, 32>}, {pipeline_mode = #tpu.pipeline_mode<synchronous>, transform_indices = @transform_4, window_bounds = array<i64: 1, 32>}, {pipeline_mode = #tpu.pipeline_mode<synchronous>, transform_indices = @transform_5, window_bounds = array<i64: 32, 32>}, {pipeline_mode = #tpu.pipeline_mode<synchronous>, transform_indices = @transform_6, window_bounds = array<i64: 8, 32>}, {pipeline_mode = #tpu.pipeline_mode<synchronous>, transform_indices = @transform_7, window_bounds = array<i64: 32, 4>}, {pipeline_mode = #tpu.pipeline_mode<synchronous>, transform_indices = @transform_8, window_bounds = array<i64: 4, 32>}, {transform_indices = @transform_9, window_bounds = array<i64: 64, 32>}]} {
    %c0 = arith.constant 0 : index
    %c0_0 = arith.constant 0 : index
    %0 = vector.load %arg1[%c0, %c0_0] : memref<64x32xf32, #tpu.memory_space<vmem>>, vector<64x32xf32>
    %1 = vector.shape_cast %0 : vector<64x32xf32> to vector<8x8x32xf32>
    %c0_1 = arith.constant 0 : index
    %c0_2 = arith.constant 0 : index
    %2 = vector.load %arg2[%c0_1, %c0_2] : memref<8x32xf32, #tpu.memory_space<vmem>>, vector<8x32xf32>
    %3 = vector.shape_cast %2 : vector<8x32xf32> to vector<1x8x32xf32>
    %4 = vector.broadcast %3 : vector<1x8x32xf32> to vector<8x8x32xf32>
    %5 = arith.addf %1, %4 : vector<8x8x32xf32>
    %6 = vector.shape_cast %5 : vector<8x8x32xf32> to vector<64x32xf32>
    %c0_3 = arith.constant 0 : index
    %c0_4 = arith.constant 0 : index
    %7 = vector.load %arg3[%c0_3, %c0_4] : memref<32x96xf32, #tpu.memory_space<vmem>>, vector<32x96xf32>
    %cst = arith.constant dense<0.000000e+00> : vector<64x96xf32>
    %8 = tpu.matmul %6, %7, %cst {dimension_numbers = #tpu.dot_dimension_numbers<[1], [0], [0], [1], [0, 0, 1, 1], [], []>} : vector<64x32xf32>, vector<32x96xf32>, vector<64x96xf32> -> vector<64x96xf32>
    %9 = vector.extract_strided_slice %8 {offsets = [0, 0], sizes = [64, 32], strides = [1, 1]} : vector<64x96xf32> to vector<64x32xf32>
    %10 = vector.shape_cast %9 : vector<64x32xf32> to vector<8x8x32xf32>
    %11 = vector.extract_strided_slice %8 {offsets = [0, 32], sizes = [64, 32], strides = [1, 1]} : vector<64x96xf32> to vector<64x32xf32>
    %12 = vector.shape_cast %11 : vector<64x32xf32> to vector<8x8x32xf32>
    %13 = vector.extract_strided_slice %8 {offsets = [0, 64], sizes = [64, 32], strides = [1, 1]} : vector<64x96xf32> to vector<64x32xf32>
    %14 = vector.shape_cast %13 : vector<64x32xf32> to vector<8x8x32xf32>
    %c0_5 = arith.constant 0 : index
    %c0_6 = arith.constant 0 : index
    %15 = vector.load %arg6[%c0_5, %c0_6] : memref<32x32xf32, #tpu.memory_space<vmem>>, vector<32x32xf32>
    %16 = tpu.concatenate %12, %12, %12, %12 in 1 : vector<8x8x32xf32>, vector<8x8x32xf32>, vector<8x8x32xf32>, vector<8x8x32xf32> -> vector<8x32x32xf32>
    %17 = vector.shape_cast %15 : vector<32x32xf32> to vector<1x32x32xf32>
    %18 = vector.broadcast %17 : vector<1x32x32xf32> to vector<8x32x32xf32>
    %19 = arith.mulf %16, %18 : vector<8x32x32xf32>
    %20 = tpu.concatenate %14, %14, %14, %14 in 1 : vector<8x8x32xf32>, vector<8x8x32xf32>, vector<8x8x32xf32>, vector<8x8x32xf32> -> vector<8x32x32xf32>
    %21 = vector.shape_cast %15 : vector<32x32xf32> to vector<1x32x32xf32>
    %22 = vector.broadcast %21 : vector<1x32x32xf32> to vector<8x32x32xf32>
    %23 = arith.mulf %20, %22 : vector<8x32x32xf32>
    "tpu.trace_start"() <{level = 10 : i32, message = "ntd,ncd->ntc"}> : () -> ()
    %cst_7 = arith.constant dense<0.000000e+00> : vector<8x8x32xf32>
    %24 = tpu.matmul %10, %19, %cst_7 {dimension_numbers = #tpu.dot_dimension_numbers<[2], [2], [1], [1], [0, 0, 0, 1, 1, 1], [0], [0]>} : vector<8x8x32xf32>, vector<8x32x32xf32>, vector<8x8x32xf32> -> vector<8x8x32xf32>
    "tpu.trace_stop"() : () -> ()
    %c0_8 = arith.constant 0 : index
    %c0_9 = arith.constant 0 : index
    %25 = vector.load %arg7[%c0_8, %c0_9] : memref<8x32xf32, #tpu.memory_space<vmem>>, vector<8x32xf32>
    %26 = vector.shape_cast %25 : vector<8x32xf32> to vector<1x8x32xf32>
    %27 = vector.broadcast %26 : vector<1x8x32xf32> to vector<8x8x32xf32>
    %28 = arith.addf %24, %27 : vector<8x8x32xf32>
    %cst_10 = arith.constant dense<0xFF800000> : vector<8x8xf32>
    %29 = vector.multi_reduction <maximumf>, %28, %cst_10 [2] : vector<8x8x32xf32> to vector<8x8xf32>
    %30 = vector.shape_cast %29 : vector<8x8xf32> to vector<8x8x1xf32>
    %31 = vector.broadcast %30 : vector<8x8x1xf32> to vector<8x8x32xf32>
    %32 = arith.subf %28, %31 : vector<8x8x32xf32>
    %33 = math.exp %32 : vector<8x8x32xf32>
    %34 = vector.shape_cast %33 : vector<8x8x32xf32> to vector<64x32xf32>
    %c0_11 = arith.constant 0 : index
    %c0_12 = arith.constant 0 : index
    %35 = vector.load %arg8[%c0_11, %c0_12] : memref<32x4xf32, #tpu.memory_space<vmem>>, vector<32x4xf32>
    %cst_13 = arith.constant dense<0.000000e+00> : vector<64x4xf32>
    %36 = tpu.matmul %34, %35, %cst_13 {dimension_numbers = #tpu.dot_dimension_numbers<[1], [0], [0], [1], [0, 0, 1, 1], [], []>} : vector<64x32xf32>, vector<32x4xf32>, vector<64x4xf32> -> vector<64x4xf32>
    %cst_14 = arith.constant 1.000000e-30 : f32
    %37 = vector.broadcast %cst_14 : f32 to vector<64x4xf32>
    %38 = arith.maximumf %36, %37 : vector<64x4xf32>
    %39 = tpu.reciprocal %38 {approx = true} : vector<64x4xf32> -> vector<64x4xf32>
    %c0_15 = arith.constant 0 : index
    %c0_16 = arith.constant 0 : index
    %40 = vector.load %arg9[%c0_15, %c0_16] : memref<4x32xf32, #tpu.memory_space<vmem>>, vector<4x32xf32>
    %cst_17 = arith.constant dense<0.000000e+00> : vector<64x32xf32>
    %41 = tpu.matmul %39, %40, %cst_17 {dimension_numbers = #tpu.dot_dimension_numbers<[1], [0], [0], [1], [0, 0, 1, 1], [], []>} : vector<64x4xf32>, vector<4x32xf32>, vector<64x32xf32> -> vector<64x32xf32>
    %42 = arith.mulf %34, %41 : vector<64x32xf32>
    %43 = vector.shape_cast %42 : vector<64x32xf32> to vector<8x8x32xf32>
    "tpu.trace_start"() <{level = 10 : i32, message = "ntc,ncd->ntd"}> : () -> ()
    %cst_18 = arith.constant dense<0.000000e+00> : vector<8x8x32xf32>
    %44 = tpu.matmul %43, %23, %cst_18 {dimension_numbers = #tpu.dot_dimension_numbers<[2], [1], [1], [2], [0, 0, 0, 1, 1, 2], [0], [0]>} : vector<8x8x32xf32>, vector<8x32x32xf32>, vector<8x8x32xf32> -> vector<8x8x32xf32>
    "tpu.trace_stop"() : () -> ()
    %45 = vector.shape_cast %44 : vector<8x8x32xf32> to vector<64x32xf32>
    %c0_19 = arith.constant 0 : index
    %c0_20 = arith.constant 0 : index
    %46 = vector.load %arg4[%c0_19, %c0_20] : memref<32x32xf32, #tpu.memory_space<vmem>>, vector<32x32xf32>
    %cst_21 = arith.constant dense<0.000000e+00> : vector<64x32xf32>
    %47 = tpu.matmul %45, %46, %cst_21 {dimension_numbers = #tpu.dot_dimension_numbers<[1], [0], [0], [1], [0, 0, 1, 1], [], []>} : vector<64x32xf32>, vector<32x32xf32>, vector<64x32xf32> -> vector<64x32xf32>
    %c0_22 = arith.constant 0 : index
    %c0_23 = arith.constant 0 : index
    %48 = vector.load %arg5[%c0_22, %c0_23] : memref<1x32xf32, #tpu.memory_space<vmem>>, vector<1x32xf32>
    %49 = vector.broadcast %48 : vector<1x32xf32> to vector<64x32xf32>
    %50 = arith.addf %47, %49 : vector<64x32xf32>
    %cst_24 = arith.constant 0.000000e+00 : f32
    %51 = vector.broadcast %cst_24 : f32 to vector<64x32xf32>
    %52 = arith.maximumf %50, %51 : vector<64x32xf32>
    %53 = arith.addf %52, %45 : vector<64x32xf32>
    %54 = arith.addf %53, %6 : vector<64x32xf32>
    %c0_25 = arith.constant 0 : index
    %c0_26 = arith.constant 0 : index
    %55 = vector.load %arg10[%c0_25, %c0_26] : memref<64x32xf32, #tpu.memory_space<vmem>>, vector<64x32xf32>
    tpu.vector_store %arg10[%c0_25, %c0_26], %54 {strides = array<i32>} : memref<64x32xf32, #tpu.memory_space<vmem>>, vector<64x32xf32>,
    return
  }
  func.func @transform_0(%arg0: i32) -> (i32, i32) {
    %c0_i32 = arith.constant 0 : i32
    %c0_i32_0 = arith.constant 0 : i32
    return %arg0, %c0_i32 : i32, i32
  }
  func.func @transform_1(%arg0: i32) -> (i32, i32) {
    %c0_i32 = arith.constant 0 : i32
    %c0_i32_0 = arith.constant 0 : i32
    %c0_i32_1 = arith.constant 0 : i32
    return %c0_i32, %c0_i32_0 : i32, i32
  }
  func.func @transform_2(%arg0: i32) -> (i32, i32) {
    %c0_i32 = arith.constant 0 : i32
    %c0_i32_0 = arith.constant 0 : i32
    %c0_i32_1 = arith.constant 0 : i32
    return %c0_i32, %c0_i32_0 : i32, i32
  }
  func.func @transform_3(%arg0: i32) -> (i32, i32) {
    %c0_i32 = arith.constant 0 : i32
    %c0_i32_0 = arith.constant 0 : i32
    %c0_i32_1 = arith.constant 0 : i32
    return %c0_i32, %c0_i32_0 : i32, i32
  }
  func.func @transform_4(%arg0: i32) -> (i32, i32) {
    %c0_i32 = arith.constant 0 : i32
    %c0_i32_0 = arith.constant 0 : i32
    %c0_i32_1 = arith.constant 0 : i32
    return %c0_i32, %c0_i32_0 : i32, i32
  }
  func.func @transform_5(%arg0: i32) -> (i32, i32) {
    %c0_i32 = arith.constant 0 : i32
    %c0_i32_0 = arith.constant 0 : i32
    %c0_i32_1 = arith.constant 0 : i32
    return %c0_i32, %c0_i32_0 : i32, i32
  }
  func.func @transform_6(%arg0: i32) -> (i32, i32) {
    %c0_i32 = arith.constant 0 : i32
    %c0_i32_0 = arith.constant 0 : i32
    %c0_i32_1 = arith.constant 0 : i32
    return %c0_i32, %c0_i32_0 : i32, i32
  }
  func.func @transform_7(%arg0: i32) -> (i32, i32) {
    %c0_i32 = arith.constant 0 : i32
    %c0_i32_0 = arith.constant 0 : i32
    %c0_i32_1 = arith.constant 0 : i32
    return %c0_i32, %c0_i32_0 : i32, i32
  }
  func.func @transform_8(%arg0: i32) -> (i32, i32) {
    %c0_i32 = arith.constant 0 : i32
    %c0_i32_0 = arith.constant 0 : i32
    %c0_i32_1 = arith.constant 0 : i32
    return %c0_i32, %c0_i32_0 : i32, i32
  }
  func.func @transform_9(%arg0: i32) -> (i32, i32) {
    %c0_i32 = arith.constant 0 : i32
    %c0_i32_0 = arith.constant 0 : i32
    return %arg0, %c0_i32 : i32, i32
  }
}

module attributes {stable_mosaic.version = 11 : i64} {
  func.func @_temporal_attn_kernel(%arg0: i32, %arg1: memref<64x32xf32, #tpu.memory_space<vmem>>, %arg2: memref<8x32xf32, #tpu.memory_space<vmem>>, %arg3: memref<32x96xf32, #tpu.memory_space<vmem>>, %arg4: memref<32x32xf32, #tpu.memory_space<vmem>>, %arg5: memref<1x32xf32, #tpu.memory_space<vmem>>, %arg6: memref<32x32xf32, #tpu.memory_space<vmem>>, %arg7: memref<8x32xf32, #tpu.memory_space<vmem>>, %arg8: memref<32x4xf32, #tpu.memory_space<vmem>>, %arg9: memref<4x32xf32, #tpu.memory_space<vmem>>, %arg10: memref<64x32xf32, #tpu.memory_space<vmem>>) attributes {dimension_semantics = [#tpu.dimension_semantics<parallel>], iteration_bounds = array<i64: 1>, scalar_prefetch = 0 : i64, scratch_operands = 0 : i64, tpu.core_type = #tpu.core_type<tc>, window_params = [{transform_indices = @transform_0, window_bounds = array<i64: 64, 32>}, {pipeline_mode = #tpu.pipeline_mode<synchronous>, transform_indices = @transform_1, window_bounds = array<i64: 8, 32>}, {pipeline_mode = #tpu.pipeline_mode<synchronous>, transform_indices = @transform_2, window_bounds = array<i64: 32, 96>}, {pipeline_mode = #tpu.pipeline_mode<synchronous>, transform_indices = @transform_3, window_bounds = array<i64: 32, 32>}, {pipeline_mode = #tpu.pipeline_mode<synchronous>, transform_indices = @transform_4, window_bounds = array<i64: 1, 32>}, {pipeline_mode = #tpu.pipeline_mode<synchronous>, transform_indices = @transform_5, window_bounds = array<i64: 32, 32>}, {pipeline_mode = #tpu.pipeline_mode<synchronous>, transform_indices = @transform_6, window_bounds = array<i64: 8, 32>}, {pipeline_mode = #tpu.pipeline_mode<synchronous>, transform_indices = @transform_7, window_bounds = array<i64: 32, 4>}, {pipeline_mode = #tpu.pipeline_mode<synchronous>, transform_indices = @transform_8, window_bounds = array<i64: 4, 32>}, {transform_indices = @transform_9, window_bounds = array<i64: 64, 32>}]} {
    %c0 = arith.constant 0 : index
    %c0_0 = arith.constant 0 : index
    %0 = vector.load %arg1[%c0, %c0_0] : memref<64x32xf32, #tpu.memory_space<vmem>>, vector<64x32xf32>
    %1 = vector.shape_cast %0 : vector<64x32xf32> to vector<8x8x32xf32>
    %c0_1 = arith.constant 0 : index
    %c0_2 = arith.constant 0 : index
    %2 = vector.load %arg2[%c0_1, %c0_2] : memref<8x32xf32, #tpu.memory_space<vmem>>, vector<8x32xf32>
    %3 = vector.shape_cast %2 : vector<8x32xf32> to vector<1x8x32xf32>
    %4 = vector.broadcast %3 : vector<1x8x32xf32> to vector<8x8x32xf32>
    %5 = arith.addf %1, %4 : vector<8x8x32xf32>
    %6 = vector.shape_cast %5 : vector<8x8x32xf32> to vector<64x32xf32>
    %c0_3 = arith.constant 0 : index
    %c0_4 = arith.constant 0 : index
    %7 = vector.load %arg3[%c0_3, %c0_4] : memref<32x96xf32, #tpu.memory_space<vmem>>, vector<32x96xf32>
    %cst = arith.constant dense<0.000000e+00> : vector<64x96xf32>
    %8 = tpu.matmul %6, %7, %cst {dimension_numbers = #tpu.dot_dimension_numbers<[1], [0], [0], [1], [0, 0, 1, 1], [], []>} : vector<64x32xf32>, vector<32x96xf32>, vector<64x96xf32> -> vector<64x96xf32>
    %9 = vector.extract_strided_slice %8 {offsets = [0, 0], sizes = [64, 32], strides = [1, 1]} : vector<64x96xf32> to vector<64x32xf32>
    %10 = vector.shape_cast %9 : vector<64x32xf32> to vector<8x8x32xf32>
    %11 = vector.extract_strided_slice %8 {offsets = [0, 32], sizes = [64, 32], strides = [1, 1]} : vector<64x96xf32> to vector<64x32xf32>
    %12 = vector.shape_cast %11 : vector<64x32xf32> to vector<8x8x32xf32>
    %13 = vector.extract_strided_slice %8 {offsets = [0, 64], sizes = [64, 32], strides = [1, 1]} : vector<64x96xf32> to vector<64x32xf32>
    %14 = vector.shape_cast %13 : vector<64x32xf32> to vector<8x8x32xf32>
    %c0_5 = arith.constant 0 : index
    %c0_6 = arith.constant 0 : index
    %15 = vector.load %arg6[%c0_5, %c0_6] : memref<32x32xf32, #tpu.memory_space<vmem>>, vector<32x32xf32>
    %16 = tpu.concatenate %12, %12, %12, %12 in 1 : vector<8x8x32xf32>, vector<8x8x32xf32>, vector<8x8x32xf32>, vector<8x8x32xf32> -> vector<8x32x32xf32>
    %17 = vector.shape_cast %15 : vector<32x32xf32> to vector<1x32x32xf32>
    %18 = vector.broadcast %17 : vector<1x32x32xf32> to vector<8x32x32xf32>
    %19 = arith.mulf %16, %18 : vector<8x32x32xf32>
    %20 = tpu.concatenate %14, %14, %14, %14 in 1 : vector<8x8x32xf32>, vector<8x8x32xf32>, vector<8x8x32xf32>, vector<8x8x32xf32> -> vector<8x32x32xf32>
    %21 = vector.shape_cast %15 : vector<32x32xf32> to vector<1x32x32xf32>
    %22 = vector.broadcast %21 : vector<1x32x32xf32> to vector<8x32x32xf32>
    %23 = arith.mulf %20, %22 : vector<8x32x32xf32>
    "tpu.trace_start"() <{level = 10 : i32, message = "ntd,ncd->ntc"}> : () -> ()
    %cst_7 = arith.constant dense<0.000000e+00> : vector<8x8x32xf32>
    %24 = tpu.matmul %10, %19, %cst_7 {dimension_numbers = #tpu.dot_dimension_numbers<[2], [2], [1], [1], [0, 0, 0, 1, 1, 1], [0], [0]>} : vector<8x8x32xf32>, vector<8x32x32xf32>, vector<8x8x32xf32> -> vector<8x8x32xf32>
    "tpu.trace_stop"() : () -> ()
    %c0_8 = arith.constant 0 : index
    %c0_9 = arith.constant 0 : index
    %25 = vector.load %arg7[%c0_8, %c0_9] : memref<8x32xf32, #tpu.memory_space<vmem>>, vector<8x32xf32>
    %26 = vector.shape_cast %25 : vector<8x32xf32> to vector<1x8x32xf32>
    %27 = vector.broadcast %26 : vector<1x8x32xf32> to vector<8x8x32xf32>
    %28 = arith.addf %24, %27 : vector<8x8x32xf32>
    %cst_10 = arith.constant dense<0xFF800000> : vector<8x8xf32>
    %29 = vector.multi_reduction <maximumf>, %28, %cst_10 [2] : vector<8x8x32xf32> to vector<8x8xf32>
    %30 = vector.shape_cast %29 : vector<8x8xf32> to vector<8x8x1xf32>
    %31 = vector.broadcast %30 : vector<8x8x1xf32> to vector<8x8x32xf32>
    %32 = arith.subf %28, %31 : vector<8x8x32xf32>
    %33 = math.exp %32 : vector<8x8x32xf32>
    %34 = vector.shape_cast %33 : vector<8x8x32xf32> to vector<64x32xf32>
    %c0_11 = arith.constant 0 : index
    %c0_12 = arith.constant 0 : index
    %35 = vector.load %arg8[%c0_11, %c0_12] : memref<32x4xf32, #tpu.memory_space<vmem>>, vector<32x4xf32>
    %cst_13 = arith.constant dense<0.000000e+00> : vector<64x4xf32>
    %36 = tpu.matmul %34, %35, %cst_13 {dimension_numbers = #tpu.dot_dimension_numbers<[1], [0], [0], [1], [0, 0, 1, 1], [], []>} : vector<64x32xf32>, vector<32x4xf32>, vector<64x4xf32> -> vector<64x4xf32>
    %cst_14 = arith.constant 1.000000e-30 : f32
    %37 = vector.broadcast %cst_14 : f32 to vector<64x4xf32>
    %38 = arith.maximumf %36, %37 : vector<64x4xf32>
    %39 = tpu.reciprocal %38 {approx = true} : vector<64x4xf32> -> vector<64x4xf32>
    %c0_15 = arith.constant 0 : index
    %c0_16 = arith.constant 0 : index
    %40 = vector.load %arg9[%c0_15, %c0_16] : memref<4x32xf32, #tpu.memory_space<vmem>>, vector<4x32xf32>
    %cst_17 = arith.constant dense<0.000000e+00> : vector<64x32xf32>
    %41 = tpu.matmul %39, %40, %cst_17 {dimension_numbers = #tpu.dot_dimension_numbers<[1], [0], [0], [1], [0, 0, 1, 1], [], []>} : vector<64x4xf32>, vector<4x32xf32>, vector<64x32xf32> -> vector<64x32xf32>
    %42 = arith.mulf %34, %41 : vector<64x32xf32>
    %43 = vector.shape_cast %42 : vector<64x32xf32> to vector<8x8x32xf32>
    "tpu.trace_start"() <{level = 10 : i32, message = "ntc,ncd->ntd"}> : () -> ()
    %cst_18 = arith.constant dense<0.000000e+00> : vector<8x8x32xf32>
    %44 = tpu.matmul %43, %23, %cst_18 {dimension_numbers = #tpu.dot_dimension_numbers<[2], [1], [1], [2], [0, 0, 0, 1, 1, 2], [0], [0]>} : vector<8x8x32xf32>, vector<8x32x32xf32>, vector<8x8x32xf32> -> vector<8x8x32xf32>
    "tpu.trace_stop"() : () -> ()
    %45 = vector.shape_cast %44 : vector<8x8x32xf32> to vector<64x32xf32>
    %c0_19 = arith.constant 0 : index
    %c0_20 = arith.constant 0 : index
    %46 = vector.load %arg4[%c0_19, %c0_20] : memref<32x32xf32, #tpu.memory_space<vmem>>, vector<32x32xf32>
    %cst_21 = arith.constant dense<0.000000e+00> : vector<64x32xf32>
    %47 = tpu.matmul %45, %46, %cst_21 {dimension_numbers = #tpu.dot_dimension_numbers<[1], [0], [0], [1], [0, 0, 1, 1], [], []>} : vector<64x32xf32>, vector<32x32xf32>, vector<64x32xf32> -> vector<64x32xf32>
    %c0_22 = arith.constant 0 : index
    %c0_23 = arith.constant 0 : index
    %48 = vector.load %arg5[%c0_22, %c0_23] : memref<1x32xf32, #tpu.memory_space<vmem>>, vector<1x32xf32>
    %49 = vector.broadcast %48 : vector<1x32xf32> to vector<64x32xf32>
    %50 = arith.addf %47, %49 : vector<64x32xf32>
    %cst_24 = arith.constant 0.000000e+00 : f32
    %51 = vector.broadcast %cst_24 : f32 to vector<64x32xf32>
    %52 = arith.maximumf %50, %51 : vector<64x32xf32>
    %53 = arith.addf %52, %45 : vector<64x32xf32>
    %54 = arith.addf %53, %6 : vector<64x32xf32>
    %c0_25 = arith.constant 0 : index
    %c0_26 = arith.constant 0 : index
    %55 = vector.load %arg10[%c0_25, %c0_26] : memref<64x32xf32, #tpu.memory_space<vmem>>, vector<64x32xf32>
    tpu.vector_store %arg10[%c0_25, %c0_26], %54 {strides = array<i32>} : memref<64x32xf32, #tpu.memory_space<vmem>>, vector<64x32xf32>,
    return
  }
  func.func @transform_0(%arg0: i32) -> (i32, i32) {
    %c0_i32 = arith.constant 0 : i32
    %c0_i32_0 = arith.constant 0 : i32
    return %arg0, %c0_i32 : i32, i32
  }
  func.func @transform_1(%arg0: i32) -> (i32, i32) {
    %c0_i32 = arith.constant 0 : i32
    %c0_i32_0 = arith.constant 0 : i32
    %c0_i32_1 = arith.constant 0 : i32
    return %c0_i32, %c0_i32_0 : i32, i32
  }
  func.func @transform_2(%arg0: i32) -> (i32, i32) {
    %c0_i32 = arith.constant 0 : i32
    %c0_i32_0 = arith.constant 0 : i32
    %c0_i32_1 = arith.constant 0 : i32
    return %c0_i32, %c0_i32_0 : i32, i32
  }
  func.func @transform_3(%arg0: i32) -> (i32, i32) {
    %c0_i32 = arith.constant 0 : i32
    %c0_i32_0 = arith.constant 0 : i32
    %c0_i32_1 = arith.constant 0 : i32
    return %c0_i32, %c0_i32_0 : i32, i32
  }
  func.func @transform_4(%arg0: i32) -> (i32, i32) {
    %c0_i32 = arith.constant 0 : i32
    %c0_i32_0 = arith.constant 0 : i32
    %c0_i32_1 = arith.constant 0 : i32
    return %c0_i32, %c0_i32_0 : i32, i32
  }
  func.func @transform_5(%arg0: i32) -> (i32, i32) {
    %c0_i32 = arith.constant 0 : i32
    %c0_i32_0 = arith.constant 0 : i32
    %c0_i32_1 = arith.constant 0 : i32
    return %c0_i32, %c0_i32_0 : i32, i32
  }
  func.func @transform_6(%arg0: i32) -> (i32, i32) {
    %c0_i32 = arith.constant 0 : i32
    %c0_i32_0 = arith.constant 0 : i32
    %c0_i32_1 = arith.constant 0 : i32
    return %c0_i32, %c0_i32_0 : i32, i32
  }
  func.func @transform_7(%arg0: i32) -> (i32, i32) {
    %c0_i32 = arith.constant 0 : i32
    %c0_i32_0 = arith.constant 0 : i32
    %c0_i32_1 = arith.constant 0 : i32
    return %c0_i32, %c0_i32_0 : i32, i32
  }
  func.func @transform_8(%arg0: i32) -> (i32, i32) {
    %c0_i32 = arith.constant 0 : i32
    %c0_i32_0 = arith.constant 0 : i32
    %c0_i32_1 = arith.constant 0 : i32
    return %c0_i32, %c0_i32_0 : i32, i32
  }
  func.func @transform_9(%arg0: i32) -> (i32, i32) {
    %c0_i32 = arith.constant 0 : i32
    %c0_i32_0 = arith.constant 0 : i32
    return %arg0, %c0_i32 : i32, i32
  }
}

</mosaic_0001>

<bundles_post_ra>
// kernel: tpu_custom_call.1
= control target key start
LH: loop header
LB: loop body
LE: loop exit
PB: predicated region body
PF: predicated region fallthrough
CT: control target
= control target key end

     0   :  { %14 = vsyncpa [#allocation3], 0  ;;  %s3081_s30 = smov [#allocation2]   ;;  %s3699_s0 = inlined_call_operand.vmem [shape: f32[64,32], index: 0, kind: input, shape index: {}]   ;;  %s3700_s1 = inlined_call_operand.hbm [shape: f32[8,32], index: 1, kind: input, shape index: {}]   ;;  %s3701_s2 = inlined_call_operand.vmem [shape: f32[32,96], index: 2, kind: input, shape index: {}]   ;;  %s3702_s3 = inlined_call_operand.vmem [shape: f32[32,32], index: 3, kind: input, shape index: {}]   ;;  %s3703_s4 = inlined_call_operand.vmem [shape: f32[1,32], index: 4, kind: input, shape index: {}]   ;;  %s3704_s5 = inlined_call_operand.vmem [shape: f32[32,32], index: 5, kind: input, shape index: {}]   ;;  %s3705_s6 = inlined_call_operand.vmem [shape: f32[8,32], index: 6, kind: input, shape index: {}]   ;;  %s3706_s7 = inlined_call_operand.vmem [shape: f32[32,4], index: 7, kind: input, shape index: {}]   ;;  %s3707_s8 = inlined_call_operand.vmem [shape: f32[4,32], index: 8, kind: input, shape index: {}]   ;;  %s3708_s9 = inlined_call_operand.vmem [shape: f32[64,32], index: 9, kind: output, shape index: {}]  }
   0x1   :  { %s23_s10 = sshll.u32 %s3081_s30, 4  ;;  %s3057_s13 = scalar_lea.hbm %s3700_s1, 128  ;;  %s24_s10 = int_to_ptr.vmem [resolvable:$true] %s23_s10 }
   0x2   :  { %p3058_p0 = scmp.ne.s32.totalorder %s3700_s1, %s3057_s13  ;;  %p3061_p1 = scmp.lt.u32.totalorder %s3057_s13, %s3700_s1 }
   0x4   :  { %p3063_p2 = pnand %p3061_p1, %p3058_p0 }
   0x6   :  { %3066 = shalt.err (!%p3063_p2)
}
   0x7   :  { %s3067_s18 = scalar_lea.vmem %s24_s10, 128  ;;  %p3072_p4 = scmp.lt.s32.totalorder %s24_s10, %s24_s10 }
   0x8   :  { %p3068_p3 = scmp.ne.s32.totalorder %s24_s10, %s3067_s18  ;;  %p3073_p5 = scmp.lt.s32.totalorder %s3067_s18, %s3067_s18 }
   0xa   :  { %p3074_p6 = por %p3073_p5, %p3072_p4 }
   0xc   :  { %p3075_p7 = pnand %p3074_p6, %p3068_p3 }
   0xe   :  { %3078 = shalt.err (!%p3075_p7)
}
   0xf   :  { %26 = dma.hbm_to_vmem [thread:$0]  %s3700_s1, 128, %s24_s10, [#allocation3]  }
  0x10   :  { %3079 = dma.done.wait [#allocation3], 128  }
  0x11   :  { %3080 = vsyncadd [#allocation3], 4294967168  ;;  %v61_v0 = vld [vmem:[%s3701_s2] sm:$0xff]  ;;  %v62_v1 = vld [vmem:[%s3701_s2 + $0x8] sm:$0xff]  ;;  %vm65_vm0 = vcmask 261120   ;;  %s3082_s16 = smov 32  }
  0x12   :  { %v63_v2 = vld [vmem:[%s3701_s2 + $0x10] sm:$0xff]  ;;  %v2722_v3 = vpack.c.bf16 %v62_v1, %v61_v0  ;;  %v64_v4 = vld [vmem:[%s3701_s2 + $0x18] sm:$0xff]  ;;  %v44_v5 = vld [vmem:[%s3699_s0] sm:$0xff]  ;;  %v3083_v29 = vmov 0.0|0.0   ;;  %vm3085_vm1 = vmmov 0   ;;  %v3086_v61 = vmov 0.0  }
  0x13   :  { %v52_v6 = vld [vmem:[#allocation2] sm:$0xff]  ;;  %v2726_v7 = vpack.c.bf16 %v64_v4, %v63_v2  ;;  %v45_v9 = vld [vmem:[%s3699_s0 + $0x8] sm:$0xff]  ;;  %v3175_v10 = vld [vmem:[%s3704_s5 + $0x10] sm:$0xff]  ;;  %2730 = vmatprep.subr.bf16.mxu1 %v3083_v29  ;;  %2500 = vmatprep.mubr.msk.f32.mxu1 %vm3085_vm1, %v3086_v61  ;;  %vm1259_vm3 = vcmask 1043456   ;;  %vm1234_vm4 = vcmask 31744  }
  0x14   :  { %v3165_v8 = vadd.f32 %v52_v6, %v44_v5  ;;  %2723 = vmatprep.subr.bf16.mxu0 %v2722_v3  ;;  %v3180_v11 = vld [vmem:[%s3704_s5] sm:$0xff]  ;;  %v46_v12 = vld [vmem:[%s3699_s0 + $0x10] sm:$0xff]  ;;  %207 = vrot.lane.b32.xlu1 %v3175_v10, %s3082_s16  ;;  %v3190_v13 = vld [vmem:[%s3704_s5 + $0x18] sm:$0xff]  ;;  %v3192_v14 = vadd.f32 %v52_v6, %v45_v9 }
  0x15   :  { %2725 = vmatpush3.bf16.msra.mxu0 %v2722_v3  ;;  %203 = vrot.lane.b32.xlu0 %v3180_v11, %s3082_s16  ;;  %v3197_v15 = vld [vmem:[%s3704_s5 + $0x8] sm:$0xff]  ;;  %v3199_v16 = vadd.f32 %v52_v6, %v46_v12  ;;  %v47_v17 = vld [vmem:[%s3699_s0 + $0x18] sm:$0xff]  ;;  %v48_v18 = vld [vmem:[%s3699_s0 + $0x20] sm:$0xff] }
  0x16   :  { %2480 = vmatprep.mubr.msk.f32.mxu0 %vm65_vm0, %v3165_v8  ;;  %2727 = vmatprep.subr.bf16.mxu0 %v2726_v7  ;;  %v3211_v19 = vadd.f32 %v52_v6, %v47_v17  ;;  %v3215_v20 = vadd.f32 %v52_v6, %v48_v18  ;;  %v49_v21 = vld [vmem:[%s3699_s0 + $0x28] sm:$0xff]  ;;  %v50_v22 = vld [vmem:[%s3699_s0 + $0x30] sm:$0xff]  ;;  %v51_v25 = vld [vmem:[%s3699_s0 + $0x38] sm:$0xff]  ;;  %s3084_s0 = smov 96  }
  0x17   :  { %v3225_v23 = vadd.f32 %v52_v6, %v49_v21  ;;  %v3229_v24 = vadd.f32 %v52_v6, %v50_v22  ;;  %v3236_v26 = vadd.f32 %v52_v6, %v51_v25  ;;  %vm3354_vm2 = vmpackc.low %vm65_vm0, %vm65_vm0 }
  0x18   :  { %209 = vrot.lane.b32.xlu1 %v3190_v13, %s3082_s16 }
  0x19   :  { %2729 = vmatpush3.bf16.msra.mxu0 %v2726_v7  ;;  %205 = vrot.lane.b32.xlu0 %v3197_v15, %s3082_s16 }
  0x1a   :  { %2738 = vmatprep.subr.bf16.mxu0 %v3083_v29 }
  0x1c   :  { %2481 = vmatmul.mubr.msk.f32.vlgmr.msra.gmra.mrb[0].mxu0 %vm65_vm0, %v3192_v14 }
  0x1d   :  { %2483 = vmatprep.mubr.msk.f32.mxu0 %vm65_vm0, %v3199_v16 }
  0x20   :  { %2484 = vmatmul.mubr.msk.f32.gmra.mrb[2].mxu0 %vm65_vm0, %v3211_v19 }
  0x21   :  { %2486 = vmatprep.mubr.msk.f32.mxu0 %vm65_vm0, %v3215_v20 }
  0x24   :  { %2487 = vmatmul.mubr.msk.f32.gmra.mrb[4].mxu0 %vm65_vm0, %v3225_v23 }
  0x25   :  { %2489 = vmatprep.mubr.msk.f32.mxu0 %vm65_vm0, %v3229_v24 }
  0x28   :  { %2490 = vmatmul.mubr.msk.f32.gmra.mrb[6].mxu0 %vm65_vm0, %v3236_v26 }
  0x29   :  { %2511 = vmatprep.mubr.msk.f32.mxu0 %vm3085_vm1, %v3086_v61 }
  0x86   :  { %v3244_v28 = vpop.permute.xlu1 %207 }
  0x87   :  { %v3242_v27 = vpop.permute.xlu0 %203 }
  0x8a   :  { %v3250_v31 = vpop.permute.xlu1 %209 }
  0x8b   :  { %v3248_v30 = vpop.permute.xlu0 %205 }
  0xef   :  { %v3252_v32 = vpop.f32.mrb[0].mxu0 }
  0xf0   :  { %v3254_v33 = vpop.f32.mrb[1].mxu0  ;;  %v219_v34 = vmul.f32 %v3252_v32, %v3242_v27  ;;  %v220_v35 = vmul.f32 %v3252_v32, %v3248_v30  ;;  %v221_v39 = vmul.f32 %v3252_v32, %v3244_v28  ;;  %v222_v40 = vmul.f32 %v3252_v32, %v3250_v31 }
  0xf1   :  { %v215_v36 = vmul.f32 %v3242_v27, %v3254_v33  ;;  %v216_v37 = vmul.f32 %v3248_v30, %v3254_v33  ;;  %v217_v43 = vmul.f32 %v3244_v28, %v3254_v33  ;;  %v218_v44 = vmul.f32 %v3250_v31, %v3254_v33 }
  0xf2   :  { %v2870_v38 = vpack.i.bf16 %v220_v35, %v219_v34  ;;  %v2880_v46 = vpack.i.bf16 %v222_v40, %v221_v39 }
  0xf3   :  { %v3268_v41 = vpop.f32.mrb[2].mxu0  ;;  %v2865_v42 = vpack.i.bf16 %v216_v37, %v215_v36  ;;  %v2875_v50 = vpack.i.bf16 %v218_v44, %v217_v43 }
  0xf4   :  { %2871 = vrot.lane.b32.xlu1 %v2870_v38, %s3084_s0  ;;  %v3275_v45 = vpop.f32.mrb[3].mxu0  ;;  %v227_v47 = vmul.f32 %v3268_v41, %v3242_v27  ;;  %v228_v48 = vmul.f32 %v3268_v41, %v3248_v30  ;;  %v229_v54 = vmul.f32 %v3268_v41, %v3244_v28  ;;  %v230_v56 = vmul.f32 %v3268_v41, %v3250_v31 }
  0xf5   :  { %2866 = vrot.lane.b32.xlu0 %v2865_v42, %s3084_s0  ;;  %v223_v51 = vmul.f32 %v3242_v27, %v3275_v45  ;;  %v224_v52 = vmul.f32 %v3248_v30, %v3275_v45  ;;  %v225_v59 = vmul.f32 %v3244_v28, %v3275_v45  ;;  %v226_v60 = vmul.f32 %v3250_v31, %v3275_v45 }
  0xf6   :  { %v2890_v55 = vpack.i.bf16 %v228_v48, %v227_v47  ;;  %v2900_v63 = vpack.i.bf16 %v230_v56, %v229_v54 }
  0xf7   :  { %v3282_v49 = vpop.f32.mrb[4].mxu0  ;;  %v2885_v58 = vpack.i.bf16 %v224_v52, %v223_v51  ;;  %v2895_v2 = vpack.i.bf16 %v226_v60, %v225_v59 }
  0xf8   :  { %2881 = vrot.lane.b32.xlu1 %v2880_v46, %s3084_s0  ;;  %v3289_v53 = vpop.f32.mrb[5].mxu0  ;;  %v235_v0 = vmul.f32 %v3282_v49, %v3242_v27  ;;  %v236_v1 = vmul.f32 %v3282_v49, %v3248_v30  ;;  %v237_v6 = vmul.f32 %v3282_v49, %v3244_v28  ;;  %v238_v7 = vmul.f32 %v3282_v49, %v3250_v31 }
  0xf9   :  { %2876 = vrot.lane.b32.xlu0 %v2875_v50, %s3084_s0  ;;  %v231_v3 = vmul.f32 %v3242_v27, %v3289_v53  ;;  %v232_v4 = vmul.f32 %v3248_v30, %v3289_v53  ;;  %v233_v12 = vmul.f32 %v3244_v28, %v3289_v53  ;;  %v234_v17 = vmul.f32 %v3250_v31, %v3289_v53 }
  0xfa   :  { %v2910_v5 = vpack.i.bf16 %v236_v1, %v235_v0  ;;  %v2920_v18 = vpack.i.bf16 %v238_v7, %v237_v6 }
  0xfb   :  { %v3296_v57 = vpop.f32.mrb[6].mxu0  ;;  %v2905_v9 = vpack.i.bf16 %v232_v4, %v231_v3  ;;  %v2915_v25 = vpack.i.bf16 %v234_v17, %v233_v12 }
  0xfc   :  { %2891 = vrot.lane.b32.xlu1 %v2890_v55, %s3084_s0  ;;  %v3307_v62 = vpop.f32.mrb[7].mxu0  ;;  %v243_v21 = vmul.f32 %v3296_v57, %v3242_v27  ;;  %v244_v22 = vmul.f32 %v3296_v57, %v3248_v30  ;;  %v245_v37 = vmul.f32 %v3296_v57, %v3244_v28  ;;  %v246_v38 = vmul.f32 %v3296_v57, %v3250_v31 }
  0xfd   :  { %2886 = vrot.lane.b32.xlu0 %v2885_v58, %s3084_s0  ;;  %v239_v34 = vmul.f32 %v3242_v27, %v3307_v62  ;;  %v240_v35 = vmul.f32 %v3248_v30, %v3307_v62  ;;  %v241_v40 = vmul.f32 %v3244_v28, %v3307_v62  ;;  %v242_v27 = vmul.f32 %v3250_v31, %v3307_v62 }
  0xfe   :  { %v2930_v36 = vpack.i.bf16 %v244_v22, %v243_v21  ;;  %v2940_v30 = vpack.i.bf16 %v246_v38, %v245_v37 }
  0xff   :  { %v2925_v39 = vpack.i.bf16 %v240_v35, %v239_v34  ;;  %v2935_v42 = vpack.i.bf16 %v242_v27, %v241_v40 }
 0x100   :  { %2901 = vrot.lane.b32.xlu1 %v2900_v63, %s3084_s0 }
 0x101   :  { %2896 = vrot.lane.b32.xlu0 %v2895_v2, %s3084_s0 }
 0x104   :  { %2911 = vrot.lane.b32.xlu1 %v2910_v5, %s3084_s0 }
 0x105   :  { %2906 = vrot.lane.b32.xlu0 %v2905_v9, %s3084_s0 }
 0x108   :  { %2921 = vrot.lane.b32.xlu1 %v2920_v18, %s3084_s0 }
 0x109   :  { %2916 = vrot.lane.b32.xlu0 %v2915_v25, %s3084_s0 }
 0x10c   :  { %2931 = vrot.lane.b32.xlu1 %v2930_v36, %s3084_s0 }
 0x10d   :  { %2926 = vrot.lane.b32.xlu0 %v2925_v39, %s3084_s0 }
 0x110   :  { %2941 = vrot.lane.b32.xlu1 %v2940_v30, %s3084_s0 }
 0x111   :  { %2936 = vrot.lane.b32.xlu0 %v2935_v42, %s3084_s0 }
 0x166   :  { %v2872_v43 = vpop.permute.xlu1 %2871 }
 0x167   :  { %v2874_v44 = vunpack.i.h.bf16 %v2872_v43  ;;  %v2873_v46 = vunpack.i.l.bf16 %v2872_v43  ;;  %v2867_v47 = vpop.permute.xlu0 %2866 }
 0x168   :  { %v2869_v48 = vunpack.i.h.bf16 %v2867_v47  ;;  %v2868_v50 = vunpack.i.l.bf16 %v2867_v47 }
 0x169   :  { %v2739_v31 = vpack.c.bf16 %v2874_v44, %v2873_v46 }
 0x16a   :  { %v2731_v51 = vpack.c.bf16 %v2869_v48, %v2868_v50  ;;  %v2882_v52 = vpop.permute.xlu1 %2881 }
 0x16b   :  { %2741 = vmatpush3.bf16.xpose.msk.msra.mxu0 %vm3354_vm2, %v2739_v31  ;;  %v2877_v54 = vpop.permute.xlu0 %2876  ;;  %v2884_v55 = vunpack.i.h.bf16 %v2882_v52  ;;  %v2883_v56 = vunpack.i.l.bf16 %v2882_v52 }
 0x16c   :  { %2733 = vmatpush3.bf16.xpose.msk.msra.mxu1 %vm3354_vm2, %v2731_v51  ;;  %2742 = vmatprep.subr.bf16.mxu0 %v3083_v29  ;;  %v2879_v58 = vunpack.i.h.bf16 %v2877_v54  ;;  %v2878_v59 = vunpack.i.l.bf16 %v2877_v54 }
 0x16d   :  { %2734 = vmatprep.subr.bf16.mxu1 %v3083_v29  ;;  %v2743_v60 = vpack.c.bf16 %v2884_v55, %v2883_v56 }
 0x16e   :  { %v2735_v63 = vpack.c.bf16 %v2879_v58, %v2878_v59  ;;  %v2892_v0 = vpop.permute.xlu1 %2891 }
 0x16f   :  { %v2887_v1 = vpop.permute.xlu0 %2886  ;;  %v2894_v2 = vunpack.i.h.bf16 %v2892_v0  ;;  %v2893_v3 = vunpack.i.l.bf16 %v2892_v0 }
 0x170   :  { %v2889_v4 = vunpack.i.h.bf16 %v2887_v1  ;;  %v2888_v5 = vunpack.i.l.bf16 %v2887_v1 }
 0x171   :  { %v2755_v6 = vpack.c.bf16 %v2894_v2, %v2893_v3 }
 0x172   :  { %v2747_v7 = vpack.c.bf16 %v2889_v4, %v2888_v5  ;;  %v2902_v9 = vpop.permute.xlu1 %2901 }
 0x173   :  { %2745 = vmatpush3.bf16.xpose.msk.msra.mxu0 %vm3354_vm2, %v2743_v60  ;;  %v2897_v12 = vpop.permute.xlu0 %2896  ;;  %v2904_v17 = vunpack.i.h.bf16 %v2902_v9  ;;  %v2903_v18 = vunpack.i.l.bf16 %v2902_v9 }
 0x174   :  { %2737 = vmatpush3.bf16.xpose.msk.msra.mxu1 %vm3354_vm2, %v2735_v63  ;;  %2754 = vmatprep.subr.bf16.mxu0 %v3083_v29  ;;  %v2899_v21 = vunpack.i.h.bf16 %v2897_v12  ;;  %v2898_v22 = vunpack.i.l.bf16 %v2897_v12 }
 0x175   :  { %2746 = vmatprep.subr.bf16.mxu1 %v3083_v29  ;;  %v2759_v25 = vpack.c.bf16 %v2904_v17, %v2903_v18 }
 0x176   :  { %v2751_v34 = vpack.c.bf16 %v2899_v21, %v2898_v22  ;;  %v2912_v35 = vpop.permute.xlu1 %2911 }
 0x177   :  { %v2907_v36 = vpop.permute.xlu0 %2906  ;;  %v2914_v37 = vunpack.i.h.bf16 %v2912_v35  ;;  %v2913_v38 = vunpack.i.l.bf16 %v2912_v35 }
 0x178   :  { %v2909_v39 = vunpack.i.h.bf16 %v2907_v36  ;;  %v2908_v40 = vunpack.i.l.bf16 %v2907_v36 }
 0x179   :  { %v2771_v27 = vpack.c.bf16 %v2914_v37, %v2913_v38 }
 0x17a   :  { %2512 = vmatmul.mubr.msk.f32.vlgmr.msra.gmra.mrb[8].mxu0 %vm65_vm0, %v3252_v32  ;;  %v2763_v30 = vpack.c.bf16 %v2909_v39, %v2908_v40  ;;  %v2922_v42 = vpop.permute.xlu1 %2921 }
 0x17b   :  { %2501 = vmatmul.mubr.msk.f32.vlgmr.msra.gmra.mrb[0].mxu1 %vm65_vm0, %v3254_v33  ;;  %2757 = vmatpush3.bf16.xpose.msk.msra.mxu0 %vm3354_vm2, %v2755_v6  ;;  %v2917_v43 = vpop.permute.xlu0 %2916  ;;  %v2924_v44 = vunpack.i.h.bf16 %v2922_v42  ;;  %v2923_v46 = vunpack.i.l.bf16 %v2922_v42  ;;  %v1086_v42 = vld [vmem:[%s3706_s7 + $0x10] sm:$0xff] }
 0x17c   :  { %2749 = vmatpush3.bf16.xpose.msk.msra.mxu1 %vm3354_vm2, %v2747_v7  ;;  %2758 = vmatprep.subr.bf16.mxu0 %v3083_v29  ;;  %v2919_v47 = vunpack.i.h.bf16 %v2917_v43  ;;  %v2918_v48 = vunpack.i.l.bf16 %v2917_v43  ;;  %v291_v7 = vld [vmem:[%s3705_s6] sm:$0xff] }
 0x17d   :  { %2750 = vmatprep.subr.bf16.mxu1 %v3083_v29  ;;  %2533 = vmatprep.mubr.msk.f32.mxu0 %vm3085_vm1, %v3086_v61  ;;  %v2775_v50 = vpack.c.bf16 %v2924_v44, %v2923_v46  ;;  %v1087_v46 = vld [vmem:[%s3706_s7 + $0x18] sm:$0xff] }
 0x17e   :  { %2522 = vmatprep.mubr.msk.f32.mxu1 %vm3085_vm1, %v3086_v61  ;;  %v2767_v31 = vpack.c.bf16 %v2919_v47, %v2918_v48  ;;  %v2932_v51 = vpop.permute.xlu1 %2931  ;;  %v2798_v47 = vpack.c.bf16 %v1087_v46, %v1086_v42 }
 0x17f   :  { %v2927_v52 = vpop.permute.xlu0 %2926  ;;  %v2934_v54 = vunpack.i.h.bf16 %v2932_v51  ;;  %v2933_v55 = vunpack.i.l.bf16 %v2932_v51 }
 0x180   :  { %v2929_v56 = vunpack.i.h.bf16 %v2927_v52  ;;  %v2928_v58 = vunpack.i.l.bf16 %v2927_v52 }
 0x181   :  { %v2787_v59 = vpack.c.bf16 %v2934_v54, %v2933_v55 }
 0x182   :  { %v2779_v60 = vpack.c.bf16 %v2929_v56, %v2928_v58  ;;  %v2942_v63 = vpop.permute.xlu1 %2941 }
 0x183   :  { %2761 = vmatpush3.bf16.xpose.msk.msra.mxu0 %vm3354_vm2, %v2759_v25  ;;  %v2937_v0 = vpop.permute.xlu0 %2936  ;;  %v2944_v1 = vunpack.i.h.bf16 %v2942_v63  ;;  %v2943_v2 = vunpack.i.l.bf16 %v2942_v63 }
 0x184   :  { %2753 = vmatpush3.bf16.xpose.msk.msra.mxu1 %vm3354_vm2, %v2751_v34  ;;  %2770 = vmatprep.subr.bf16.mxu0 %v3083_v29  ;;  %v2939_v3 = vunpack.i.h.bf16 %v2937_v0  ;;  %v2938_v4 = vunpack.i.l.bf16 %v2937_v0 }
 0x185   :  { %2762 = vmatprep.subr.bf16.mxu1 %v3083_v29  ;;  %v2791_v5 = vpack.c.bf16 %v2944_v1, %v2943_v2 }
 0x186   :  { %v2783_v6 = vpack.c.bf16 %v2939_v3, %v2938_v4 }
 0x18a   :  { %2534 = vmatmul.mubr.msk.f32.vlgmr.msra.gmra.mrb[10].mxu0 %vm65_vm0, %v3268_v41 }
 0x18b   :  { %2523 = vmatmul.mubr.msk.f32.vlgmr.msra.gmra.mrb[2].mxu1 %vm65_vm0, %v3275_v45  ;;  %2773 = vmatpush3.bf16.xpose.msk.msra.mxu0 %vm3354_vm2, %v2771_v27  ;;  %v1084_v27 = vld [vmem:[%s3706_s7] sm:$0xff] }
 0x18c   :  { %2765 = vmatpush3.bf16.xpose.msk.msra.mxu1 %vm3354_vm2, %v2763_v30  ;;  %2774 = vmatprep.subr.bf16.mxu0 %v3083_v29  ;;  %v1085_v30 = vld [vmem:[%s3706_s7 + $0x8] sm:$0xff]  ;;  %s3087_s7 = smov 64  }
 0x18d   :  { %2766 = vmatprep.subr.bf16.mxu1 %v3083_v29  ;;  %2555 = vmatprep.mubr.msk.f32.mxu0 %vm3085_vm1, %v3086_v61  ;;  %v2794_v44 = vpack.c.bf16 %v1085_v30, %v1084_v27 }
 0x18e   :  { %2544 = vmatprep.mubr.msk.f32.mxu1 %vm3085_vm1, %v3086_v61 }
 0x193   :  { %2777 = vmatpush3.bf16.xpose.msk.msra.mxu0 %vm3354_vm2, %v2775_v50 }
 0x194   :  { %2769 = vmatpush3.bf16.xpose.msk.msra.mxu1 %vm3354_vm2, %v2767_v31  ;;  %2786 = vmatprep.subr.bf16.mxu0 %v3083_v29 }
 0x195   :  { %2778 = vmatprep.subr.bf16.mxu1 %v3083_v29 }
 0x19a   :  { %2556 = vmatmul.mubr.msk.f32.vlgmr.msra.gmra.mrb[12].mxu0 %vm65_vm0, %v3282_v49 }
 0x19b   :  { %2545 = vmatmul.mubr.msk.f32.vlgmr.msra.gmra.mrb[4].mxu1 %vm65_vm0, %v3289_v53  ;;  %2789 = vmatpush3.bf16.xpose.msk.msra.mxu0 %vm3354_vm2, %v2787_v59 }
 0x19c   :  { %2781 = vmatpush3.bf16.xpose.msk.msra.mxu1 %vm3354_vm2, %v2779_v60  ;;  %2790 = vmatprep.subr.bf16.mxu0 %v3083_v29 }
 0x19d   :  { %2782 = vmatprep.subr.bf16.mxu1 %v3083_v29  ;;  %2577 = vmatprep.mubr.msk.f32.mxu0 %vm3085_vm1, %v3086_v61 }
 0x19e   :  { %2566 = vmatprep.mubr.msk.f32.mxu1 %vm3085_vm1, %v3086_v61 }
 0x1a3   :  { %2793 = vmatpush3.bf16.xpose.msk.msra.mxu0 %vm3354_vm2, %v2791_v5 }
 0x1a4   :  { %2785 = vmatpush3.bf16.xpose.msk.msra.mxu1 %vm3354_vm2, %v2783_v6 }
 0x1a5   :  { %2795 = vmatprep.subr.bf16.mxu1 %v2794_v44 }
 0x1aa   :  { %2578 = vmatmul.mubr.msk.f32.vlgmr.msra.gmra.mrb[14].mxu0 %vm65_vm0, %v3296_v57 }
 0x1ab   :  { %2567 = vmatmul.mubr.msk.f32.vlgmr.msra.gmra.mrb[6].mxu1 %vm65_vm0, %v3307_v62 }
 0x1ac   :  { %2797 = vmatpush3.bf16.msra.mxu1 %v2794_v44 }
 0x1ad   :  { %2799 = vmatprep.subr.bf16.mxu1 %v2798_v47 }
 0x1b0   :  { %2801 = vmatpush3.bf16.msra.mxu1 %v2798_v47 }
 0x1b1   :  { %2814 = vmatprep.subr.bf16.mxu1 %v3083_v29 }
 0x24d   :  { %v474_v9 = vpop.f32.mrb[8].mxu0 }
 0x24e   :  { %v475_v12 = vadd.f32 %v474_v9, %v291_v7  ;;  %v381_v17 = vpop.f32.mrb[0].mxu1  ;;  %v2513_v18 = vpop.f32.mrb[9].mxu0 }
 0x24f   :  { %v382_v21 = vadd.f32 %v381_v17, %v291_v7  ;;  %v2502_v22 = vpop.f32.mrb[1].mxu1 }
 0x250   :  { %v1039_v25 = vsel %vm65_vm0, %v475_v12, -inf }
 0x251   :  { %1040 = vmax.xlane.f32.xlu1 %v1039_v25  ;;  %v1036_v28 = vsel %vm65_vm0, %v382_v21, -inf }
 0x252   :  { %1037 = vmax.xlane.f32.xlu0 %v1036_v28 }
 0x25d   :  { %v660_v34 = vpop.f32.mrb[10].mxu0 }
 0x25e   :  { %v567_v35 = vpop.f32.mrb[2].mxu1  ;;  %v2535_v36 = vpop.f32.mrb[11].mxu0  ;;  %v661_v39 = vadd.f32 %v660_v34, %v291_v7 }
 0x25f   :  { %v568_v37 = vadd.f32 %v567_v35, %v291_v7  ;;  %v2524_v38 = vpop.f32.mrb[3].mxu1 }
 0x260   :  { %v1045_v43 = vsel %vm65_vm0, %v661_v39, -inf }
 0x261   :  { %v1042_v40 = vsel %vm65_vm0, %v568_v37, -inf }
 0x262   :  { %1043 = vmax.xlane.f32.xlu0 %v1042_v40 }
 0x266   :  { %1046 = vmax.xlane.f32.xlu0 %v1045_v43 }
 0x26d   :  { %v846_v48 = vpop.f32.mrb[12].mxu0 }
 0x26e   :  { %v847_v50 = vadd.f32 %v846_v48, %v291_v7  ;;  %v753_v31 = vpop.f32.mrb[4].mxu1  ;;  %v2557_v51 = vpop.f32.mrb[13].mxu0 }
 0x26f   :  { %v754_v52 = vadd.f32 %v753_v31, %v291_v7  ;;  %v2546_v54 = vpop.f32.mrb[5].mxu1 }
 0x270   :  { %v1051_v55 = vsel %vm65_vm0, %v847_v50, -inf }
 0x271   :  { %1052 = vmax.xlane.f32.xlu0 %v1051_v55  ;;  %v1048_v56 = vsel %vm65_vm0, %v754_v52, -inf }
 0x272   :  { %1049 = vmax.xlane.f32.xlu1 %v1048_v56 }
 0x27d   :  { %v1032_v58 = vpop.f32.mrb[14].mxu0 }
 0x27e   :  { %v1033_v59 = vadd.f32 %v1032_v58, %v291_v7  ;;  %v939_v60 = vpop.f32.mrb[6].mxu1  ;;  %v2579_v63 = vpop.f32.mrb[15].mxu0 }
 0x27f   :  { %v940_v0 = vadd.f32 %v939_v60, %v291_v7  ;;  %v2568_v1 = vpop.f32.mrb[7].mxu1 }
 0x280   :  { %v1057_v2 = vsel %vm65_vm0, %v1033_v59, -inf }
 0x281   :  { %1058 = vmax.xlane.f32.xlu0 %v1057_v2  ;;  %v1054_v3 = vsel %vm65_vm0, %v940_v0, -inf }
 0x282   :  { %1055 = vmax.xlane.f32.xlu1 %v1054_v3 }
 0x293   :  { %247 = vrot.lane.b32.xlu1 %v3180_v11, %s3087_s7 }
 0x297   :  { %249 = vrot.lane.b32.xlu0 %v3197_v15, %s3087_s7  ;;  %251 = vrot.lane.b32.xlu1 %v3175_v10, %s3087_s7 }
 0x29b   :  { %253 = vrot.lane.b32.xlu1 %v3190_v13, %s3087_s7 }
 0x2de   :  { %v1041_v4 = vpop.xlane.xlu1 %1040 }
 0x2df   :  { %v1061_v5 = vsub.f32 %v475_v12, %v1041_v4  ;;  %v1038_v6 = vpop.xlane.xlu0 %1037 }
 0x2e0   :  { %v1060_v7 = vsub.f32 %v382_v21, %v1038_v6 }
 0x2e1   :  { %v1070_v9 = vmul.f32 1.442695, %v1061_v5 }
 0x2e2   :  { %v1068_v17 = vmul.f32 1.442695, %v1060_v7 }
 0x2e4   :  { %3025 = vpow2.f32 %v1068_v17 }
 0x2e5   :  { %3027 = vpow2.f32 %v1070_v9 }
 0x2ee   :  { %v3464_v18 = vpop.eup %3025 }
 0x2ef   :  { %v3466_v11 = vpop.eup %3027  ;;  %v1044_v22 = vpop.xlane.xlu0 %1043  ;;  %2588 = vmatprep.mubr.msk.f32.mxu1 %vm65_vm0, %v3464_v18 }
 0x2f0   :  { %v1062_v10 = vsub.f32 %v568_v37, %v1044_v22  ;;  %2589 = vmatmul.mubr.msk.f32.vlgmr.msra.gmra.mrb[8].mxu1 %vm65_vm0, %v3466_v11 }
 0x2f2   :  { %v1072_v13 = vmul.f32 1.442695, %v1062_v10 }
 0x2f3   :  { %v1047_v15 = vpop.xlane.xlu0 %1046 }
 0x2f4   :  { %3029 = vpow2.f32 %v1072_v13  ;;  %v1063_v12 = vsub.f32 %v661_v39, %v1047_v15 }
 0x2f6   :  { %v1074_v21 = vmul.f32 1.442695, %v1063_v12 }
 0x2f8   :  { %3031 = vpow2.f32 %v1074_v21 }
 0x2fe   :  { %v3472_v25 = vpop.eup %3029  ;;  %v1053_v28 = vpop.xlane.xlu0 %1052 }
 0x2ff   :  { %v1065_v34 = vsub.f32 %v847_v50, %v1053_v28  ;;  %v1050_v35 = vpop.xlane.xlu1 %1049  ;;  %2591 = vmatprep.mubr.msk.f32.mxu1 %vm65_vm0, %v3472_v25 }
 0x300   :  { %v1064_v36 = vsub.f32 %v754_v52, %v1050_v35 }
 0x301   :  { %v1078_v38 = vmul.f32 1.442695, %v1065_v34 }
 0x302   :  { %v3476_v37 = vpop.eup %3031  ;;  %v1076_v40 = vmul.f32 1.442695, %v1064_v36 }
 0x303   :  { %2592 = vmatmul.mubr.msk.f32.gmra.mrb[10].mxu1 %vm65_vm0, %v3476_v37 }
 0x304   :  { %3033 = vpow2.f32 %v1076_v40 }
 0x305   :  { %3035 = vpow2.f32 %v1078_v38 }
 0x30e   :  { %v3480_v39 = vpop.eup %3033  ;;  %v1059_v27 = vpop.xlane.xlu0 %1058 }
 0x30f   :  { %v3482_v30 = vpop.eup %3035  ;;  %v1067_v42 = vsub.f32 %v1033_v59, %v1059_v27  ;;  %2594 = vmatprep.mubr.msk.f32.mxu1 %vm65_vm0, %v3480_v39  ;;  %v1056_v43 = vpop.xlane.xlu1 %1055 }
 0x310   :  { %v1066_v44 = vsub.f32 %v940_v0, %v1056_v43  ;;  %2595 = vmatmul.mubr.msk.f32.gmra.mrb[12].mxu1 %vm65_vm0, %v3482_v30 }
 0x311   :  { %v1082_v46 = vmul.f32 1.442695, %v1067_v42 }
 0x312   :  { %v1080_v47 = vmul.f32 1.442695, %v1066_v44  ;;  %v3488_v48 = vpop.permute.xlu0 %249 }
 0x313   :  { %v3490_v50 = vpop.permute.xlu1 %247  ;;  %v260_v31 = vmul.f32 %v3488_v48, %v3254_v33  ;;  %v264_v55 = vmul.f32 %v3252_v32, %v3488_v48  ;;  %v268_v60 = vmul.f32 %v3488_v48, %v3275_v45  ;;  %v276_v10 = vmul.f32 %v3488_v48, %v3289_v53 }
 0x314   :  { %3037 = vpow2.f32 %v1080_v47  ;;  %v259_v51 = vmul.f32 %v3490_v50, %v3254_v33  ;;  %v263_v54 = vmul.f32 %v3252_v32, %v3490_v50  ;;  %v267_v59 = vmul.f32 %v3490_v50, %v3275_v45 }
 0x315   :  { %3039 = vpow2.f32 %v1082_v46  ;;  %v275_v22 = vmul.f32 %v3490_v50, %v3289_v53  ;;  %v271_v15 = vmul.f32 %v3268_v41, %v3490_v50  ;;  %v283_v38 = vmul.f32 %v3490_v50, %v3307_v62 }
 0x316   :  { %v2945_v52 = vpack.i.bf16 %v260_v31, %v259_v51  ;;  %v2955_v58 = vpack.i.bf16 %v264_v55, %v263_v54  ;;  %v2965_v3 = vpack.i.bf16 %v268_v60, %v267_v59  ;;  %v284_v40 = vmul.f32 %v3488_v48, %v3307_v62 }
 0x317   :  { %v3500_v56 = vpop.permute.xlu1 %251  ;;  %v279_v42 = vmul.f32 %v3282_v49, %v3490_v50  ;;  %v280_v43 = vmul.f32 %v3282_v49, %v3488_v48  ;;  %v287_v54 = vmul.f32 %v3296_v57, %v3490_v50  ;;  %v288_v55 = vmul.f32 %v3296_v57, %v3488_v48  ;;  %v1233_v50 = vld [vmem:[%s3707_s8] sm:$0xf] }
 0x318   :  { %2946 = vrot.lane.b32.xlu0 %v2945_v52, %s3087_s7  ;;  %v261_v0 = vmul.f32 %v3500_v56, %v3254_v33  ;;  %v265_v9 = vmul.f32 %v3252_v32, %v3500_v56  ;;  %v277_v34 = vmul.f32 %v3500_v56, %v3289_v53  ;;  %v273_v35 = vmul.f32 %v3268_v41, %v3500_v56 }
 0x319   :  { %v2990_v44 = vpack.i.bf16 %v280_v43, %v279_v42  ;;  %v285_v47 = vmul.f32 %v3500_v56, %v3307_v62  ;;  %v281_v31 = vmul.f32 %v3282_v49, %v3500_v56  ;;  %2600 = vmatprep.subr.msk.mxu0 %vm1259_vm3, %v1233_v50 }
 0x31a   :  { %2601 = vmatpush3.msk.msra.mxu0 %vm1259_vm3, %v1233_v50 }
 0x31b   :  { %v254_v63 = vpop.permute.xlu1 %253  ;;  %2802 = vmatprep.subr.bf16.mxu0 %v3083_v29 }
 0x31c   :  { %2956 = vrot.lane.b32.xlu0 %v2955_v58, %s3087_s7  ;;  %v262_v1 = vmul.f32 %v254_v63, %v3254_v33  ;;  %v270_v5 = vmul.f32 %v254_v63, %v3275_v45  ;;  %v266_v7 = vmul.f32 %v3252_v32, %v254_v63  ;;  %v269_v33 = vmul.f32 %v3500_v56, %v3275_v45 }
 0x31d   :  { %v272_v45 = vmul.f32 %v3268_v41, %v3488_v48  ;;  %v2985_v32 = vpack.i.bf16 %v276_v10, %v275_v22  ;;  %v278_v12 = vmul.f32 %v254_v63, %v3289_v53  ;;  %v274_v28 = vmul.f32 %v3268_v41, %v254_v63 }
 0x31e   :  { %v3511_v2 = vpop.eup %3037  ;;  %v2950_v4 = vpack.i.bf16 %v262_v1, %v261_v0  ;;  %v2975_v17 = vpack.i.bf16 %v270_v5, %v269_v33  ;;  %v2960_v13 = vpack.i.bf16 %v266_v7, %v265_v9  ;;  %v3005_v53 = vpack.i.bf16 %v284_v40, %v283_v38 }
 0x31f   :  { %v3514_v6 = vpop.eup %3039  ;;  %2597 = vmatprep.mubr.msk.f32.mxu1 %vm65_vm0, %v3511_v2  ;;  %v2970_v21 = vpack.i.bf16 %v272_v45, %v271_v15  ;;  %v2995_v36 = vpack.i.bf16 %v278_v12, %v277_v34  ;;  %v2980_v27 = vpack.i.bf16 %v274_v28, %v273_v35  ;;  %v286_v41 = vmul.f32 %v254_v63, %v3307_v62 }
 0x320   :  { %2598 = vmatmul.mubr.msk.f32.gmra.mrb[14].mxu1 %vm65_vm0, %v3514_v6  ;;  %2966 = vrot.lane.b32.xlu0 %v2965_v3, %s3087_s7  ;;  %v282_v46 = vmul.f32 %v3282_v49, %v254_v63  ;;  %v3010_v58 = vpack.i.bf16 %v288_v55, %v287_v54  ;;  %v290_v62 = vmul.f32 %v3296_v57, %v254_v63 }
 0x321   :  { %2951 = vrot.lane.b32.xlu1 %v2950_v4, %s3087_s7  ;;  %2644 = vmatprep.mubr.msk.f32.mxu1 %vm3085_vm1, %v3086_v61  ;;  %v3015_v51 = vpack.i.bf16 %v286_v41, %v285_v47  ;;  %v289_v49 = vmul.f32 %v3296_v57, %v3500_v56 }
 0x322   :  { %v3000_v52 = vpack.i.bf16 %v282_v46, %v281_v31 }
 0x323   :  { %v3020_v59 = vpack.i.bf16 %v290_v62, %v289_v49 }
 0x324   :  { %2976 = vrot.lane.b32.xlu0 %v2975_v17, %s3087_s7 }
 0x325   :  { %2961 = vrot.lane.b32.xlu1 %v2960_v13, %s3087_s7 }
 0x328   :  { %2986 = vrot.lane.b32.xlu0 %v2985_v32, %s3087_s7 }
 0x329   :  { %2971 = vrot.lane.b32.xlu1 %v2970_v21, %s3087_s7 }
 0x32c   :  { %2996 = vrot.lane.b32.xlu0 %v2995_v36, %s3087_s7 }
 0x32d   :  { %2981 = vrot.lane.b32.xlu1 %v2980_v27, %s3087_s7 }
 0x330   :  { %3006 = vrot.lane.b32.xlu0 %v3005_v53, %s3087_s7 }
 0x331   :  { %2991 = vrot.lane.b32.xlu1 %v2990_v44, %s3087_s7 }
 0x334   :  { %3016 = vrot.lane.b32.xlu0 %v3015_v51, %s3087_s7 }
 0x335   :  { %3001 = vrot.lane.b32.xlu1 %v3000_v52, %s3087_s7 }
 0x339   :  { %3011 = vrot.lane.b32.xlu1 %v3010_v58, %s3087_s7 }
 0x33d   :  { %3021 = vrot.lane.b32.xlu1 %v3020_v59, %s3087_s7 }
 0x38a   :  { %v2947_v48 = vpop.permute.xlu0 %2946 }
 0x38b   :  { %v2949_v22 = vunpack.i.h.bf16 %v2947_v48  ;;  %v2948_v10 = vunpack.i.l.bf16 %v2947_v48 }
 0x38d   :  { %v2803_v32 = vpack.c.bf16 %v2949_v22, %v2948_v10 }
 0x38e   :  { %v3580_v60 = vpop.permute.xlu0 %2956 }
 0x38f   :  { %v2959_v62 = vunpack.i.h.bf16 %v3580_v60  ;;  %v2958_v49 = vunpack.i.l.bf16 %v3580_v60 }
 0x392   :  { %v2967_v63 = vpop.permute.xlu0 %2966 }
 0x393   :  { %v2969_v0 = vunpack.i.h.bf16 %v2967_v63  ;;  %v2968_v1 = vunpack.i.l.bf16 %v2967_v63  ;;  %v2952_v13 = vpop.permute.xlu1 %2951 }
 0x394   :  { %v2954_v12 = vunpack.i.h.bf16 %v2952_v13  ;;  %v2953_v21 = vunpack.i.l.bf16 %v2952_v13 }
 0x395   :  { %v2815_v3 = vpack.c.bf16 %v2969_v0, %v2968_v1  ;;  %v2809_v0 = vpack.c.bf16 %v2959_v62, %v2958_v49 }
 0x396   :  { %v2977_v57 = vpop.permute.xlu0 %2976  ;;  %v2806_v28 = vpack.c.bf16 %v2954_v12, %v2953_v21 }
 0x397   :  { %v2979_v56 = vunpack.i.h.bf16 %v2977_v57  ;;  %v2978_v4 = vunpack.i.l.bf16 %v2977_v57  ;;  %2816 = vmatpush3.bf16.msra.mxu1 %v2815_v3  ;;  %v2962_v58 = vpop.permute.xlu1 %2961 }
 0x398   :  { %2817 = vmatprep.subr.bf16.mxu1 %v3083_v29  ;;  %v2964_v1 = vunpack.i.h.bf16 %v2962_v58  ;;  %v2963_v3 = vunpack.i.l.bf16 %v2962_v58 }
 0x399   :  { %v2818_v5 = vpack.c.bf16 %v2979_v56, %v2978_v4 }
 0x39a   :  { %v2812_v56 = vpack.c.bf16 %v2964_v1, %v2963_v3 }
 0x39b   :  { %2819 = vmatpush3.bf16.msra.mxu1 %v2818_v5  ;;  %v2972_v59 = vpop.permute.xlu1 %2971 }
 0x39c   :  { %2826 = vmatprep.subr.bf16.mxu1 %v3083_v29  ;;  %v2974_v4 = vunpack.i.h.bf16 %v2972_v59  ;;  %v2973_v60 = vunpack.i.l.bf16 %v2972_v59 }
 0x39f   :  { %v2982_v57 = vpop.permute.xlu1 %2981 }
 0x3c3   :  { %v2590_v7 = vpop.f32.mrb[8].mxu1 }
 0x3c4   :  { %v1218_v33 = vmax.f32 %v2590_v7, 1e-30  ;;  %v1178_v9 = vpop.f32.mrb[9].mxu1  ;;  %v2984_v7 = vunpack.i.h.bf16 %v2982_v57 }
 0x3c5   :  { %v1217_v17 = vmax.f32 %v1178_v9, 1e-30  ;;  %v2992_v9 = vpop.permute.xlu1 %2991 }
 0x3c6   :  { %v2994_v10 = vunpack.i.h.bf16 %v2992_v9  ;;  %v2993_v13 = vunpack.i.l.bf16 %v2992_v9 }
 0x3c7   :  { %3041 = vrcp.f32 %v1217_v17  ;;  %v2987_v17 = vpop.permute.xlu0 %2986 }
 0x3c8   :  { %3043 = vrcp.f32 %v1218_v33  ;;  %v2983_v33 = vunpack.i.l.bf16 %v2982_v57 }
 0x3ca   :  { %v2824_v22 = vpack.c.bf16 %v2984_v7, %v2983_v33 }
 0x3d1   :  { %v3042_v15 = vpop.eup %3041 }
 0x3d2   :  { %v3044_v45 = vpop.eup %3043  ;;  %2602 = vmatprep.mubr.msk.f32.mxu0 %vm1234_vm4, %v3042_v15  ;;  %v2988_v15 = vunpack.i.l.bf16 %v2987_v17 }
 0x3d3   :  { %2603 = vmatmul.mubr.msk.f32.vlgmr.msra.gmra.mrb[16].mxu0 %vm1234_vm4, %v3044_v45  ;;  %v3002_v45 = vpop.permute.xlu1 %3001 }
 0x3d4   :  { %2804 = vmatpush3.bf16.msra.mxu0 %v2803_v32  ;;  %v2997_v32 = vpop.permute.xlu0 %2996 }
 0x3d5   :  { %2805 = vmatprep.subr.bf16.mxu0 %v3083_v29 }
 0x3d6   :  { %v2593_v34 = vpop.f32.mrb[10].mxu1 }
 0x3d7   :  { %v1220_v35 = vmax.f32 %v2593_v34, 1e-30  ;;  %v1188_v36 = vpop.f32.mrb[11].mxu1  ;;  %v2833_v34 = vpack.c.bf16 %v2994_v10, %v2993_v13 }
 0x3d8   :  { %v1219_v38 = vmax.f32 %v1188_v36, 1e-30  ;;  %2807 = vmatpush3.bf16.msra.mxu0 %v2806_v28  ;;  %v3003_v36 = vunpack.i.l.bf16 %v3002_v45 }
 0x3d9   :  { %2808 = vmatprep.subr.bf16.mxu0 %v3083_v29 }
 0x3da   :  { %3045 = vrcp.f32 %v1219_v38 }
 0x3db   :  { %3047 = vrcp.f32 %v1220_v35  ;;  %v3004_v35 = vunpack.i.h.bf16 %v3002_v45 }
 0x3e3   :  { %v2596_v40 = vpop.f32.mrb[12].mxu1 }
 0x3e4   :  { %v3046_v27 = vpop.eup %3045  ;;  %v1222_v42 = vmax.f32 %v2596_v40, 1e-30  ;;  %v1198_v43 = vpop.f32.mrb[13].mxu1 }
 0x3e5   :  { %v3048_v53 = vpop.eup %3047  ;;  %v1221_v41 = vmax.f32 %v1198_v43, 1e-30  ;;  %2605 = vmatprep.mubr.msk.f32.mxu0 %vm1234_vm4, %v3046_v27  ;;  %v2999_v27 = vunpack.i.h.bf16 %v2997_v32  ;;  %v2836_v43 = vpack.c.bf16 %v3004_v35, %v3003_v36 }
 0x3e6   :  { %2606 = vmatmul.mubr.msk.f32.gmra.mrb[18].mxu0 %vm1234_vm4, %v3048_v53  ;;  %v3012_v53 = vpop.permute.xlu1 %3011 }
 0x3e7   :  { %3049 = vrcp.f32 %v1221_v41  ;;  %v3014_v41 = vunpack.i.h.bf16 %v3012_v53 }
 0x3e8   :  { %3051 = vrcp.f32 %v1222_v42  ;;  %v2998_v42 = vunpack.i.l.bf16 %v2997_v32 }
 0x3f1   :  { %v3050_v44 = vpop.eup %3049 }
 0x3f2   :  { %v3052_v46 = vpop.eup %3051  ;;  %2608 = vmatprep.mubr.msk.f32.mxu0 %vm1234_vm4, %v3050_v44  ;;  %v3013_v44 = vunpack.i.l.bf16 %v3012_v53 }
 0x3f3   :  { %v2599_v47 = vpop.f32.mrb[14].mxu1  ;;  %2609 = vmatmul.mubr.msk.f32.gmra.mrb[20].mxu0 %vm1234_vm4, %v3052_v46 }
 0x3f4   :  { %v1224_v31 = vmax.f32 %v2599_v47, 1e-30  ;;  %v1208_v51 = vpop.f32.mrb[15].mxu1  ;;  %v2845_v58 = vpack.c.bf16 %v3014_v41, %v3013_v44 }
 0x3f5   :  { %v1223_v52 = vmax.f32 %v1208_v51, 1e-30 }
 0x3f7   :  { %3053 = vrcp.f32 %v1223_v52 }
 0x3f8   :  { %3055 = vrcp.f32 %v1224_v31  ;;  %v3022_v31 = vpop.permute.xlu1 %3021 }
 0x3f9   :  { %v3024_v62 = vunpack.i.h.bf16 %v3022_v31  ;;  %v3023_v49 = vunpack.i.l.bf16 %v3022_v31 }
 0x401   :  { %v3054_v54 = vpop.eup %3053 }
 0x402   :  { %v3056_v55 = vpop.eup %3055  ;;  %2611 = vmatprep.mubr.msk.f32.mxu0 %vm1234_vm4, %v3054_v54 }
 0x403   :  { %2612 = vmatmul.mubr.msk.f32.gmra.mrb[22].mxu0 %vm1234_vm4, %v3056_v55 }
 0x404   :  { %2622 = vmatprep.mubr.msk.f32.mxu0 %vm3085_vm1, %v3086_v61 }
 0x4a6   :  { %v2604_v50 = vpop.f32.mrb[16].mxu0 }
 0x4a7   :  { %v1329_v48 = vpop.f32.mrb[17].mxu0  ;;  %v1369_v5 = vmul.f32 %v3466_v11, %v2604_v50  ;;  %v2989_v11 = vunpack.i.h.bf16 %v2987_v17 }
 0x4a8   :  { %v1368_v63 = vmul.f32 %v3464_v18, %v1329_v48  ;;  %v2821_v18 = vpack.c.bf16 %v2974_v4, %v2973_v60 }
 0x4a9   :  { %v2827_v40 = vpack.c.bf16 %v2989_v11, %v2988_v15 }
 0x4aa   :  { %2623 = vmatmul.mubr.msk.f32.vlgmr.msra.gmra.mrb[24].mxu0 %vm65_vm0, %v1368_v63 }
 0x4ab   :  { %2810 = vmatpush3.bf16.msra.mxu0 %v2809_v0  ;;  %2633 = vmatprep.mubr.msk.f32.mxu0 %vm3085_vm1, %v3086_v61  ;;  %v2848_v0 = vpack.c.bf16 %v3024_v62, %v3023_v49 }
 0x4ac   :  { %2811 = vmatprep.subr.bf16.mxu0 %v3083_v29 }
 0x4af   :  { %2813 = vmatpush3.bf16.msra.mxu0 %v2812_v56 }
 0x4b0   :  { %2820 = vmatprep.subr.bf16.mxu0 %v3083_v29 }
 0x4b2   :  { %2634 = vmatmul.mubr.msk.f32.vlgmr.msra.gmra.mrb[26].mxu0 %vm65_vm0, %v1369_v5 }
 0x4b3   :  { %2822 = vmatpush3.bf16.msra.mxu0 %v2821_v18  ;;  %2655 = vmatprep.mubr.msk.f32.mxu0 %vm3085_vm1, %v3086_v61 }
 0x4b4   :  { %2823 = vmatprep.subr.bf16.mxu0 %v3083_v29 }
 0x4b7   :  { %2825 = vmatpush3.bf16.msra.mxu0 %v2824_v22 }
 0x4b8   :  { %2832 = vmatprep.subr.bf16.mxu0 %v3083_v29 }
 0x4b9   :  { %v2607_v12 = vpop.f32.mrb[18].mxu0 }
 0x4ba   :  { %v1371_v21 = vmul.f32 %v3476_v37, %v2607_v12  ;;  %v1339_v28 = vpop.f32.mrb[19].mxu0  ;;  %v2830_v37 = vpack.c.bf16 %v2999_v27, %v2998_v42 }
 0x4bb   :  { %v1370_v38 = vmul.f32 %v3472_v25, %v1339_v28  ;;  %v3007_v25 = vpop.permute.xlu0 %3006  ;;  %v2338_v28 = vld [vmem:[%s3703_s4] ss:$0 sm:$0xff] }
 0x4bc   :  { %2656 = vmatmul.mubr.msk.f32.vlgmr.msra.gmra.mrb[28].mxu0 %vm65_vm0, %v1371_v21  ;;  %v3009_v46 = vunpack.i.h.bf16 %v3007_v25  ;;  %v3008_v47 = vunpack.i.l.bf16 %v3007_v25 }
 0x4bd   :  { %2834 = vmatpush3.bf16.msra.mxu0 %v2833_v34  ;;  %2645 = vmatmul.mubr.msk.f32.vlgmr.msra.gmra.mrb[16].mxu1 %vm65_vm0, %v1370_v38 }
 0x4be   :  { %2828 = vmatpush3.bf16.msra.mxu1 %v2827_v40  ;;  %2835 = vmatprep.subr.bf16.mxu0 %v3083_v29  ;;  %v2839_v50 = vpack.c.bf16 %v3009_v46, %v3008_v47 }
 0x4bf   :  { %2829 = vmatprep.subr.bf16.mxu1 %v3083_v29  ;;  %2677 = vmatprep.mubr.msk.f32.mxu0 %vm3085_vm1, %v3086_v61  ;;  %v3017_v51 = vpop.permute.xlu0 %3016 }
 0x4c0   :  { %2666 = vmatprep.mubr.msk.f32.mxu1 %vm3085_vm1, %v3086_v61  ;;  %v3019_v48 = vunpack.i.h.bf16 %v3017_v51  ;;  %v3018_v63 = vunpack.i.l.bf16 %v3017_v51 }
 0x4c1   :  { %2837 = vmatpush3.bf16.msra.mxu0 %v2836_v43 }
 0x4c2   :  { %2831 = vmatpush3.bf16.msra.mxu1 %v2830_v37  ;;  %2844 = vmatprep.subr.bf16.mxu0 %v3083_v29 }
 0x4c3   :  { %2838 = vmatprep.subr.bf16.mxu1 %v3083_v29 }
 0x4c6   :  { %v2610_v52 = vpop.f32.mrb[20].mxu0 }
 0x4c7   :  { %v1373_v54 = vmul.f32 %v3482_v30, %v2610_v52  ;;  %v1349_v55 = vpop.f32.mrb[21].mxu0  ;;  %v2842_v30 = vpack.c.bf16 %v3019_v48, %v3018_v63 }
 0x4c8   :  { %v1372_v59 = vmul.f32 %v3480_v39, %v1349_v55 }
 0x4c9   :  { %2678 = vmatmul.mubr.msk.f32.vlgmr.msra.gmra.mrb[30].mxu0 %vm65_vm0, %v1373_v54 }
 0x4ca   :  { %2846 = vmatpush3.bf16.msra.mxu0 %v2845_v58  ;;  %2667 = vmatmul.mubr.msk.f32.vlgmr.msra.gmra.mrb[18].mxu1 %vm65_vm0, %v1372_v59 }
 0x4cb   :  { %2840 = vmatpush3.bf16.msra.mxu1 %v2839_v50  ;;  %2847 = vmatprep.subr.bf16.mxu0 %v3083_v29 }
 0x4cc   :  { %2841 = vmatprep.subr.bf16.mxu1 %v3083_v29  ;;  %2699 = vmatprep.mubr.msk.f32.mxu0 %vm3085_vm1, %v3086_v61  ;;  %v2088_v29 = vld [vmem:[%s3702_s3] sm:$0xff] }
 0x4cd   :  { %2688 = vmatprep.mubr.msk.f32.mxu1 %vm3085_vm1, %v3086_v61  ;;  %v2089_v61 = vld [vmem:[%s3702_s3 + $0x8] sm:$0xff] }
 0x4ce   :  { %2849 = vmatpush3.bf16.msra.mxu0 %v2848_v0  ;;  %v2850_v56 = vpack.c.bf16 %v2089_v61, %v2088_v29 }
 0x4cf   :  { %2843 = vmatpush3.bf16.msra.mxu1 %v2842_v30 }
 0x4d0   :  { %2851 = vmatprep.subr.bf16.mxu1 %v2850_v56 }
 0x4d6   :  { %v2613_v39 = vpop.f32.mrb[22].mxu0 }
 0x4d7   :  { %v1375_v1 = vmul.f32 %v3514_v6, %v2613_v39  ;;  %v1359_v3 = vpop.f32.mrb[23].mxu0  ;;  %v2090_v6 = vld [vmem:[%s3702_s3 + $0x10] sm:$0xff] }
 0x4d8   :  { %v1374_v57 = vmul.f32 %v3511_v2, %v1359_v3  ;;  %v2091_v2 = vld [vmem:[%s3702_s3 + $0x18] sm:$0xff] }
 0x4d9   :  { %2700 = vmatmul.mubr.msk.f32.vlgmr.msra.gmra.mrb[32].mxu0 %vm65_vm0, %v1375_v1  ;;  %v2854_v4 = vpack.c.bf16 %v2091_v2, %v2090_v6 }
 0x4da   :  { %2689 = vmatmul.mubr.msk.f32.vlgmr.msra.gmra.mrb[20].mxu1 %vm65_vm0, %v1374_v57 }
 0x4db   :  { %2853 = vmatpush3.bf16.msra.mxu1 %v2850_v56 }
 0x4dc   :  { %2855 = vmatprep.subr.bf16.mxu1 %v2854_v4 }
 0x4df   :  { %2857 = vmatpush3.bf16.msra.mxu1 %v2854_v4 }
 0x57d   :  { %v1461_v60 = vpop.f32.mrb[24].mxu0 }
 0x57e   :  { %v2624_v5 = vpop.f32.mrb[25].mxu0  ;;  %2710 = vmatprep.mubr.msk.f32.mxu1 %vm65_vm0, %v1461_v60 }
 0x585   :  { %v1550_v18 = vpop.f32.mrb[26].mxu0 }
 0x586   :  { %v2635_v7 = vpop.f32.mrb[27].mxu0  ;;  %2711 = vmatmul.mubr.msk.f32.vlgmr.msra.gmra.mrb[22].mxu1 %vm65_vm0, %v1550_v18 }
 0x58f   :  { %v1728_v33 = vpop.f32.mrb[28].mxu0 }
 0x590   :  { %v1639_v9 = vpop.f32.mrb[16].mxu1  ;;  %v2657_v17 = vpop.f32.mrb[29].mxu0 }
 0x591   :  { %v2646_v22 = vpop.f32.mrb[17].mxu1  ;;  %2713 = vmatprep.mubr.msk.f32.mxu1 %vm65_vm0, %v1639_v9 }
 0x592   :  { %2714 = vmatmul.mubr.msk.f32.gmra.mrb[24].mxu1 %vm65_vm0, %v1728_v33 }
 0x59c   :  { %v1906_v10 = vpop.f32.mrb[30].mxu0 }
 0x59d   :  { %v1817_v13 = vpop.f32.mrb[18].mxu1  ;;  %v2679_v11 = vpop.f32.mrb[31].mxu0 }
 0x59e   :  { %v2668_v15 = vpop.f32.mrb[19].mxu1  ;;  %2716 = vmatprep.mubr.msk.f32.mxu1 %vm65_vm0, %v1817_v13 }
 0x59f   :  { %2717 = vmatmul.mubr.msk.f32.gmra.mrb[26].mxu1 %vm65_vm0, %v1906_v10 }
 0x5ac   :  { %v2084_v45 = vpop.f32.mrb[32].mxu0 }
 0x5ad   :  { %v1995_v32 = vpop.f32.mrb[20].mxu1  ;;  %v2701_v12 = vpop.f32.mrb[33].mxu0 }
 0x5ae   :  { %v2690_v21 = vpop.f32.mrb[21].mxu1  ;;  %2719 = vmatprep.mubr.msk.f32.mxu1 %vm65_vm0, %v1995_v32 }
 0x5af   :  { %2720 = vmatmul.mubr.msk.f32.gmra.mrb[28].mxu1 %vm65_vm0, %v2084_v45 }
 0x659   :  { %v2712_v34 = vpop.f32.mrb[22].mxu1 }
 0x65a   :  { %v2195_v35 = vadd.f32 %v2712_v34, %v2338_v28  ;;  %v2189_v36 = vpop.f32.mrb[23].mxu1 }
 0x65b   :  { %v2190_v38 = vadd.f32 %v2338_v28, %v2189_v36 }
 0x65c   :  { %v2229_v40 = vmax.f32 %v2195_v35, 0.0 }
 0x65d   :  { %v2228_v27 = vmax.f32 %v2190_v38, 0.0 }
 0x65e   :  { %v2237_v42 = vadd.f32 %v2229_v40, %v1550_v18 }
 0x65f   :  { %v2236_v43 = vadd.f32 %v2228_v27, %v1461_v60 }
 0x660   :  { %v2245_v53 = vadd.f32 %v2237_v42, %v3192_v14 }
 0x661   :  { %v2244_v37 = vadd.f32 %v2236_v43, %v3165_v8 }
 0x662   :  { %2253 = vst.msk [vmem:[%s3708_s9 + $0x8] sm:$0xff] %vm65_vm0, %v2245_v53 }
 0x663   :  { %2252 = vst.msk [vmem:[%s3708_s9] sm:$0xff] %vm65_vm0, %v2244_v37 }
 0x665   :  { %v2715_v25 = vpop.f32.mrb[24].mxu1 }
 0x666   :  { %v2205_v41 = vadd.f32 %v2715_v25, %v2338_v28  ;;  %v2199_v44 = vpop.f32.mrb[25].mxu1 }
 0x667   :  { %v2200_v46 = vadd.f32 %v2338_v28, %v2199_v44 }
 0x668   :  { %v2231_v47 = vmax.f32 %v2205_v41, 0.0 }
 0x669   :  { %v2230_v31 = vmax.f32 %v2200_v46, 0.0 }
 0x66a   :  { %v2239_v51 = vadd.f32 %v2231_v47, %v1728_v33 }
 0x66b   :  { %v2238_v14 = vadd.f32 %v2230_v31, %v1639_v9 }
 0x66c   :  { %v2247_v8 = vadd.f32 %v2239_v51, %v3211_v19 }
 0x66d   :  { %v2246_v52 = vadd.f32 %v2238_v14, %v3199_v16 }
 0x66e   :  { %2255 = vst.msk [vmem:[%s3708_s9 + $0x18] sm:$0xff] %vm65_vm0, %v2247_v8 }
 0x66f   :  { %2254 = vst.msk [vmem:[%s3708_s9 + $0x10] sm:$0xff] %vm65_vm0, %v2246_v52 }
 0x672   :  { %v2718_v54 = vpop.f32.mrb[26].mxu1 }
 0x673   :  { %v2215_v55 = vadd.f32 %v2718_v54, %v2338_v28  ;;  %v2209_v58 = vpop.f32.mrb[27].mxu1 }
 0x674   :  { %v2210_v62 = vadd.f32 %v2338_v28, %v2209_v58 }
 0x675   :  { %v2233_v49 = vmax.f32 %v2215_v55, 0.0 }
 0x676   :  { %v2232_v59 = vmax.f32 %v2210_v62, 0.0 }
 0x677   :  { %v2241_v50 = vadd.f32 %v2233_v49, %v1906_v10 }
 0x678   :  { %v2240_v19 = vadd.f32 %v2232_v59, %v1817_v13 }
 0x679   :  { %v2249_v16 = vadd.f32 %v2241_v50, %v3225_v23 }
 0x67a   :  { %v2248_v48 = vadd.f32 %v2240_v19, %v3215_v20 }
 0x67b   :  { %2257 = vst.msk [vmem:[%s3708_s9 + $0x28] sm:$0xff] %vm65_vm0, %v2249_v16 }
 0x67c   :  { %2256 = vst.msk [vmem:[%s3708_s9 + $0x20] sm:$0xff] %vm65_vm0, %v2248_v48 }
 0x682   :  { %v2721_v63 = vpop.f32.mrb[28].mxu1 }
 0x683   :  { %v2225_v0 = vadd.f32 %v2721_v63, %v2338_v28  ;;  %v2219_v30 = vpop.f32.mrb[29].mxu1 }
 0x684   :  { %v2220_v39 = vadd.f32 %v2338_v28, %v2219_v30 }
 0x685   :  { %v2235_v1 = vmax.f32 %v2225_v0, 0.0 }
 0x686   :  { %v2234_v3 = vmax.f32 %v2220_v39, 0.0 }
 0x687   :  { %v2243_v57 = vadd.f32 %v2235_v1, %v2084_v45 }
 0x688   :  { %v2242_v23 = vadd.f32 %v2234_v3, %v1995_v32 }
 0x689   :  { %v2251_v20 = vadd.f32 %v2243_v57, %v3236_v26 }
 0x68a   :  { %v2250_v29 = vadd.f32 %v2242_v23, %v3229_v24 }
 0x68b   :  { %2259 = vst.msk [vmem:[%s3708_s9 + $0x38] sm:$0xff] %vm65_vm0, %v2251_v20 }
 0x68c   :  { %2258 = vst.msk [vmem:[%s3708_s9 + $0x30] sm:$0xff] %vm65_vm0, %v2250_v29 }
 0x68d   :  { %2264 = vsyncpa [#allocation3], 1 }

// kernel: tpu_custom_call.1
= control target key start
LH: loop header
LB: loop body
LE: loop exit
PB: predicated region body
PF: predicated region fallthrough
CT: control target
= control target key end

     0   :  { %14 = vsyncpa [#allocation3], 0  ;;  %s3081_s30 = smov [#allocation2]   ;;  %s3699_s0 = inlined_call_operand.vmem [shape: f32[64,32], index: 0, kind: input, shape index: {}]   ;;  %s3700_s1 = inlined_call_operand.hbm [shape: f32[8,32], index: 1, kind: input, shape index: {}]   ;;  %s3701_s2 = inlined_call_operand.vmem [shape: f32[32,96], index: 2, kind: input, shape index: {}]   ;;  %s3702_s3 = inlined_call_operand.vmem [shape: f32[32,32], index: 3, kind: input, shape index: {}]   ;;  %s3703_s4 = inlined_call_operand.vmem [shape: f32[1,32], index: 4, kind: input, shape index: {}]   ;;  %s3704_s5 = inlined_call_operand.vmem [shape: f32[32,32], index: 5, kind: input, shape index: {}]   ;;  %s3705_s6 = inlined_call_operand.vmem [shape: f32[8,32], index: 6, kind: input, shape index: {}]   ;;  %s3706_s7 = inlined_call_operand.vmem [shape: f32[32,4], index: 7, kind: input, shape index: {}]   ;;  %s3707_s8 = inlined_call_operand.vmem [shape: f32[4,32], index: 8, kind: input, shape index: {}]   ;;  %s3708_s9 = inlined_call_operand.vmem [shape: f32[64,32], index: 9, kind: output, shape index: {}]  }
   0x1   :  { %s23_s10 = sshll.u32 %s3081_s30, 4  ;;  %s3057_s13 = scalar_lea.hbm %s3700_s1, 128  ;;  %s24_s10 = int_to_ptr.vmem [resolvable:$true] %s23_s10 }
   0x2   :  { %p3058_p0 = scmp.ne.s32.totalorder %s3700_s1, %s3057_s13  ;;  %p3061_p1 = scmp.lt.u32.totalorder %s3057_s13, %s3700_s1 }
   0x4   :  { %p3063_p2 = pnand %p3061_p1, %p3058_p0 }
   0x6   :  { %3066 = shalt.err (!%p3063_p2)
}
   0x7   :  { %s3067_s18 = scalar_lea.vmem %s24_s10, 128  ;;  %p3072_p4 = scmp.lt.s32.totalorder %s24_s10, %s24_s10 }
   0x8   :  { %p3068_p3 = scmp.ne.s32.totalorder %s24_s10, %s3067_s18  ;;  %p3073_p5 = scmp.lt.s32.totalorder %s3067_s18, %s3067_s18 }
   0xa   :  { %p3074_p6 = por %p3073_p5, %p3072_p4 }
   0xc   :  { %p3075_p7 = pnand %p3074_p6, %p3068_p3 }
   0xe   :  { %3078 = shalt.err (!%p3075_p7)
}
   0xf   :  { %26 = dma.hbm_to_vmem [thread:$0]  %s3700_s1, 128, %s24_s10, [#allocation3]  }
  0x10   :  { %3079 = dma.done.wait [#allocation3], 128  }
  0x11   :  { %3080 = vsyncadd [#allocation3], 4294967168  ;;  %v61_v0 = vld [vmem:[%s3701_s2] sm:$0xff]  ;;  %v62_v1 = vld [vmem:[%s3701_s2 + $0x8] sm:$0xff]  ;;  %vm65_vm0 = vcmask 261120   ;;  %s3082_s16 = smov 32  }
  0x12   :  { %v63_v2 = vld [vmem:[%s3701_s2 + $0x10] sm:$0xff]  ;;  %v2722_v3 = vpack.c.bf16 %v62_v1, %v61_v0  ;;  %v64_v4 = vld [vmem:[%s3701_s2 + $0x18] sm:$0xff]  ;;  %v44_v5 = vld [vmem:[%s3699_s0] sm:$0xff]  ;;  %v3083_v29 = vmov 0.0|0.0   ;;  %vm3085_vm1 = vmmov 0   ;;  %v3086_v61 = vmov 0.0  }
  0x13   :  { %v52_v6 = vld [vmem:[#allocation2] sm:$0xff]  ;;  %v2726_v7 = vpack.c.bf16 %v64_v4, %v63_v2  ;;  %v45_v9 = vld [vmem:[%s3699_s0 + $0x8] sm:$0xff]  ;;  %v3175_v10 = vld [vmem:[%s3704_s5 + $0x10] sm:$0xff]  ;;  %2730 = vmatprep.subr.bf16.mxu1 %v3083_v29  ;;  %2500 = vmatprep.mubr.msk.f32.mxu1 %vm3085_vm1, %v3086_v61  ;;  %vm1259_vm3 = vcmask 1043456   ;;  %vm1234_vm4 = vcmask 31744  }
  0x14   :  { %v3165_v8 = vadd.f32 %v52_v6, %v44_v5  ;;  %2723 = vmatprep.subr.bf16.mxu0 %v2722_v3  ;;  %v3180_v11 = vld [vmem:[%s3704_s5] sm:$0xff]  ;;  %v46_v12 = vld [vmem:[%s3699_s0 + $0x10] sm:$0xff]  ;;  %207 = vrot.lane.b32.xlu1 %v3175_v10, %s3082_s16  ;;  %v3190_v13 = vld [vmem:[%s3704_s5 + $0x18] sm:$0xff]  ;;  %v3192_v14 = vadd.f32 %v52_v6, %v45_v9 }
  0x15   :  { %2725 = vmatpush3.bf16.msra.mxu0 %v2722_v3  ;;  %203 = vrot.lane.b32.xlu0 %v3180_v11, %s3082_s16  ;;  %v3197_v15 = vld [vmem:[%s3704_s5 + $0x8] sm:$0xff]  ;;  %v3199_v16 = vadd.f32 %v52_v6, %v46_v12  ;;  %v47_v17 = vld [vmem:[%s3699_s0 + $0x18] sm:$0xff]  ;;  %v48_v18 = vld [vmem:[%s3699_s0 + $0x20] sm:$0xff] }
  0x16   :  { %2480 = vmatprep.mubr.msk.f32.mxu0 %vm65_vm0, %v3165_v8  ;;  %2727 = vmatprep.subr.bf16.mxu0 %v2726_v7  ;;  %v3211_v19 = vadd.f32 %v52_v6, %v47_v17  ;;  %v3215_v20 = vadd.f32 %v52_v6, %v48_v18  ;;  %v49_v21 = vld [vmem:[%s3699_s0 + $0x28] sm:$0xff]  ;;  %v50_v22 = vld [vmem:[%s3699_s0 + $0x30] sm:$0xff]  ;;  %v51_v25 = vld [vmem:[%s3699_s0 + $0x38] sm:$0xff]  ;;  %s3084_s0 = smov 96  }
  0x17   :  { %v3225_v23 = vadd.f32 %v52_v6, %v49_v21  ;;  %v3229_v24 = vadd.f32 %v52_v6, %v50_v22  ;;  %v3236_v26 = vadd.f32 %v52_v6, %v51_v25  ;;  %vm3354_vm2 = vmpackc.low %vm65_vm0, %vm65_vm0 }
  0x18   :  { %209 = vrot.lane.b32.xlu1 %v3190_v13, %s3082_s16 }
  0x19   :  { %2729 = vmatpush3.bf16.msra.mxu0 %v2726_v7  ;;  %205 = vrot.lane.b32.xlu0 %v3197_v15, %s3082_s16 }
  0x1a   :  { %2738 = vmatprep.subr.bf16.mxu0 %v3083_v29 }
  0x1c   :  { %2481 = vmatmul.mubr.msk.f32.vlgmr.msra.gmra.mrb[0].mxu0 %vm65_vm0, %v3192_v14 }
  0x1d   :  { %2483 = vmatprep.mubr.msk.f32.mxu0 %vm65_vm0, %v3199_v16 }
  0x20   :  { %2484 = vmatmul.mubr.msk.f32.gmra.mrb[2].mxu0 %vm65_vm0, %v3211_v19 }
  0x21   :  { %2486 = vmatprep.mubr.msk.f32.mxu0 %vm65_vm0, %v3215_v20 }
  0x24   :  { %2487 = vmatmul.mubr.msk.f32.gmra.mrb[4].mxu0 %vm65_vm0, %v3225_v23 }
  0x25   :  { %2489 = vmatprep.mubr.msk.f32.mxu0 %vm65_vm0, %v3229_v24 }
  0x28   :  { %2490 = vmatmul.mubr.msk.f32.gmra.mrb[6].mxu0 %vm65_vm0, %v3236_v26 }
  0x29   :  { %2511 = vmatprep.mubr.msk.f32.mxu0 %vm3085_vm1, %v3086_v61 }
  0x86   :  { %v3244_v28 = vpop.permute.xlu1 %207 }
  0x87   :  { %v3242_v27 = vpop.permute.xlu0 %203 }
  0x8a   :  { %v3250_v31 = vpop.permute.xlu1 %209 }
  0x8b   :  { %v3248_v30 = vpop.permute.xlu0 %205 }
  0xef   :  { %v3252_v32 = vpop.f32.mrb[0].mxu0 }
  0xf0   :  { %v3254_v33 = vpop.f32.mrb[1].mxu0  ;;  %v219_v34 = vmul.f32 %v3252_v32, %v3242_v27  ;;  %v220_v35 = vmul.f32 %v3252_v32, %v3248_v30  ;;  %v221_v39 = vmul.f32 %v3252_v32, %v3244_v28  ;;  %v222_v40 = vmul.f32 %v3252_v32, %v3250_v31 }
  0xf1   :  { %v215_v36 = vmul.f32 %v3242_v27, %v3254_v33  ;;  %v216_v37 = vmul.f32 %v3248_v30, %v3254_v33  ;;  %v217_v43 = vmul.f32 %v3244_v28, %v3254_v33  ;;  %v218_v44 = vmul.f32 %v3250_v31, %v3254_v33 }
  0xf2   :  { %v2870_v38 = vpack.i.bf16 %v220_v35, %v219_v34  ;;  %v2880_v46 = vpack.i.bf16 %v222_v40, %v221_v39 }
  0xf3   :  { %v3268_v41 = vpop.f32.mrb[2].mxu0  ;;  %v2865_v42 = vpack.i.bf16 %v216_v37, %v215_v36  ;;  %v2875_v50 = vpack.i.bf16 %v218_v44, %v217_v43 }
  0xf4   :  { %2871 = vrot.lane.b32.xlu1 %v2870_v38, %s3084_s0  ;;  %v3275_v45 = vpop.f32.mrb[3].mxu0  ;;  %v227_v47 = vmul.f32 %v3268_v41, %v3242_v27  ;;  %v228_v48 = vmul.f32 %v3268_v41, %v3248_v30  ;;  %v229_v54 = vmul.f32 %v3268_v41, %v3244_v28  ;;  %v230_v56 = vmul.f32 %v3268_v41, %v3250_v31 }
  0xf5   :  { %2866 = vrot.lane.b32.xlu0 %v2865_v42, %s3084_s0  ;;  %v223_v51 = vmul.f32 %v3242_v27, %v3275_v45  ;;  %v224_v52 = vmul.f32 %v3248_v30, %v3275_v45  ;;  %v225_v59 = vmul.f32 %v3244_v28, %v3275_v45  ;;  %v226_v60 = vmul.f32 %v3250_v31, %v3275_v45 }
  0xf6   :  { %v2890_v55 = vpack.i.bf16 %v228_v48, %v227_v47  ;;  %v2900_v63 = vpack.i.bf16 %v230_v56, %v229_v54 }
  0xf7   :  { %v3282_v49 = vpop.f32.mrb[4].mxu0  ;;  %v2885_v58 = vpack.i.bf16 %v224_v52, %v223_v51  ;;  %v2895_v2 = vpack.i.bf16 %v226_v60, %v225_v59 }
  0xf8   :  { %2881 = vrot.lane.b32.xlu1 %v2880_v46, %s3084_s0  ;;  %v3289_v53 = vpop.f32.mrb[5].mxu0  ;;  %v235_v0 = vmul.f32 %v3282_v49, %v3242_v27  ;;  %v236_v1 = vmul.f32 %v3282_v49, %v3248_v30  ;;  %v237_v6 = vmul.f32 %v3282_v49, %v3244_v28  ;;  %v238_v7 = vmul.f32 %v3282_v49, %v3250_v31 }
  0xf9   :  { %2876 = vrot.lane.b32.xlu0 %v2875_v50, %s3084_s0  ;;  %v231_v3 = vmul.f32 %v3242_v27, %v3289_v53  ;;  %v232_v4 = vmul.f32 %v3248_v30, %v3289_v53  ;;  %v233_v12 = vmul.f32 %v3244_v28, %v3289_v53  ;;  %v234_v17 = vmul.f32 %v3250_v31, %v3289_v53 }
  0xfa   :  { %v2910_v5 = vpack.i.bf16 %v236_v1, %v235_v0  ;;  %v2920_v18 = vpack.i.bf16 %v238_v7, %v237_v6 }
  0xfb   :  { %v3296_v57 = vpop.f32.mrb[6].mxu0  ;;  %v2905_v9 = vpack.i.bf16 %v232_v4, %v231_v3  ;;  %v2915_v25 = vpack.i.bf16 %v234_v17, %v233_v12 }
  0xfc   :  { %2891 = vrot.lane.b32.xlu1 %v2890_v55, %s3084_s0  ;;  %v3307_v62 = vpop.f32.mrb[7].mxu0  ;;  %v243_v21 = vmul.f32 %v3296_v57, %v3242_v27  ;;  %v244_v22 = vmul.f32 %v3296_v57, %v3248_v30  ;;  %v245_v37 = vmul.f32 %v3296_v57, %v3244_v28  ;;  %v246_v38 = vmul.f32 %v3296_v57, %v3250_v31 }
  0xfd   :  { %2886 = vrot.lane.b32.xlu0 %v2885_v58, %s3084_s0  ;;  %v239_v34 = vmul.f32 %v3242_v27, %v3307_v62  ;;  %v240_v35 = vmul.f32 %v3248_v30, %v3307_v62  ;;  %v241_v40 = vmul.f32 %v3244_v28, %v3307_v62  ;;  %v242_v27 = vmul.f32 %v3250_v31, %v3307_v62 }
  0xfe   :  { %v2930_v36 = vpack.i.bf16 %v244_v22, %v243_v21  ;;  %v2940_v30 = vpack.i.bf16 %v246_v38, %v245_v37 }
  0xff   :  { %v2925_v39 = vpack.i.bf16 %v240_v35, %v239_v34  ;;  %v2935_v42 = vpack.i.bf16 %v242_v27, %v241_v40 }
 0x100   :  { %2901 = vrot.lane.b32.xlu1 %v2900_v63, %s3084_s0 }
 0x101   :  { %2896 = vrot.lane.b32.xlu0 %v2895_v2, %s3084_s0 }
 0x104   :  { %2911 = vrot.lane.b32.xlu1 %v2910_v5, %s3084_s0 }
 0x105   :  { %2906 = vrot.lane.b32.xlu0 %v2905_v9, %s3084_s0 }
 0x108   :  { %2921 = vrot.lane.b32.xlu1 %v2920_v18, %s3084_s0 }
 0x109   :  { %2916 = vrot.lane.b32.xlu0 %v2915_v25, %s3084_s0 }
 0x10c   :  { %2931 = vrot.lane.b32.xlu1 %v2930_v36, %s3084_s0 }
 0x10d   :  { %2926 = vrot.lane.b32.xlu0 %v2925_v39, %s3084_s0 }
 0x110   :  { %2941 = vrot.lane.b32.xlu1 %v2940_v30, %s3084_s0 }
 0x111   :  { %2936 = vrot.lane.b32.xlu0 %v2935_v42, %s3084_s0 }
 0x166   :  { %v2872_v43 = vpop.permute.xlu1 %2871 }
 0x167   :  { %v2874_v44 = vunpack.i.h.bf16 %v2872_v43  ;;  %v2873_v46 = vunpack.i.l.bf16 %v2872_v43  ;;  %v2867_v47 = vpop.permute.xlu0 %2866 }
 0x168   :  { %v2869_v48 = vunpack.i.h.bf16 %v2867_v47  ;;  %v2868_v50 = vunpack.i.l.bf16 %v2867_v47 }
 0x169   :  { %v2739_v31 = vpack.c.bf16 %v2874_v44, %v2873_v46 }
 0x16a   :  { %v2731_v51 = vpack.c.bf16 %v2869_v48, %v2868_v50  ;;  %v2882_v52 = vpop.permute.xlu1 %2881 }
 0x16b   :  { %2741 = vmatpush3.bf16.xpose.msk.msra.mxu0 %vm3354_vm2, %v2739_v31  ;;  %v2877_v54 = vpop.permute.xlu0 %2876  ;;  %v2884_v55 = vunpack.i.h.bf16 %v2882_v52  ;;  %v2883_v56 = vunpack.i.l.bf16 %v2882_v52 }
 0x16c   :  { %2733 = vmatpush3.bf16.xpose.msk.msra.mxu1 %vm3354_vm2, %v2731_v51  ;;  %2742 = vmatprep.subr.bf16.mxu0 %v3083_v29  ;;  %v2879_v58 = vunpack.i.h.bf16 %v2877_v54  ;;  %v2878_v59 = vunpack.i.l.bf16 %v2877_v54 }
 0x16d   :  { %2734 = vmatprep.subr.bf16.mxu1 %v3083_v29  ;;  %v2743_v60 = vpack.c.bf16 %v2884_v55, %v2883_v56 }
 0x16e   :  { %v2735_v63 = vpack.c.bf16 %v2879_v58, %v2878_v59  ;;  %v2892_v0 = vpop.permute.xlu1 %2891 }
 0x16f   :  { %v2887_v1 = vpop.permute.xlu0 %2886  ;;  %v2894_v2 = vunpack.i.h.bf16 %v2892_v0  ;;  %v2893_v3 = vunpack.i.l.bf16 %v2892_v0 }
 0x170   :  { %v2889_v4 = vunpack.i.h.bf16 %v2887_v1  ;;  %v2888_v5 = vunpack.i.l.bf16 %v2887_v1 }
 0x171   :  { %v2755_v6 = vpack.c.bf16 %v2894_v2, %v2893_v3 }
 0x172   :  { %v2747_v7 = vpack.c.bf16 %v2889_v4, %v2888_v5  ;;  %v2902_v9 = vpop.permute.xlu1 %2901 }
 0x173   :  { %2745 = vmatpush3.bf16.xpose.msk.msra.mxu0 %vm3354_vm2, %v2743_v60  ;;  %v2897_v12 = vpop.permute.xlu0 %2896  ;;  %v2904_v17 = vunpack.i.h.bf16 %v2902_v9  ;;  %v2903_v18 = vunpack.i.l.bf16 %v2902_v9 }
 0x174   :  { %2737 = vmatpush3.bf16.xpose.msk.msra.mxu1 %vm3354_vm2, %v2735_v63  ;;  %2754 = vmatprep.subr.bf16.mxu0 %v3083_v29  ;;  %v2899_v21 = vunpack.i.h.bf16 %v2897_v12  ;;  %v2898_v22 = vunpack.i.l.bf16 %v2897_v12 }
 0x175   :  { %2746 = vmatprep.subr.bf16.mxu1 %v3083_v29  ;;  %v2759_v25 = vpack.c.bf16 %v2904_v17, %v2903_v18 }
 0x176   :  { %v2751_v34 = vpack.c.bf16 %v2899_v21, %v2898_v22  ;;  %v2912_v35 = vpop.permute.xlu1 %2911 }
 0x177   :  { %v2907_v36 = vpop.permute.xlu0 %2906  ;;  %v2914_v37 = vunpack.i.h.bf16 %v2912_v35  ;;  %v2913_v38 = vunpack.i.l.bf16 %v2912_v35 }
 0x178   :  { %v2909_v39 = vunpack.i.h.bf16 %v2907_v36  ;;  %v2908_v40 = vunpack.i.l.bf16 %v2907_v36 }
 0x179   :  { %v2771_v27 = vpack.c.bf16 %v2914_v37, %v2913_v38 }
 0x17a   :  { %2512 = vmatmul.mubr.msk.f32.vlgmr.msra.gmra.mrb[8].mxu0 %vm65_vm0, %v3252_v32  ;;  %v2763_v30 = vpack.c.bf16 %v2909_v39, %v2908_v40  ;;  %v2922_v42 = vpop.permute.xlu1 %2921 }
 0x17b   :  { %2501 = vmatmul.mubr.msk.f32.vlgmr.msra.gmra.mrb[0].mxu1 %vm65_vm0, %v3254_v33  ;;  %2757 = vmatpush3.bf16.xpose.msk.msra.mxu0 %vm3354_vm2, %v2755_v6  ;;  %v2917_v43 = vpop.permute.xlu0 %2916  ;;  %v2924_v44 = vunpack.i.h.bf16 %v2922_v42  ;;  %v2923_v46 = vunpack.i.l.bf16 %v2922_v42  ;;  %v1086_v42 = vld [vmem:[%s3706_s7 + $0x10] sm:$0xff] }
 0x17c   :  { %2749 = vmatpush3.bf16.xpose.msk.msra.mxu1 %vm3354_vm2, %v2747_v7  ;;  %2758 = vmatprep.subr.bf16.mxu0 %v3083_v29  ;;  %v2919_v47 = vunpack.i.h.bf16 %v2917_v43  ;;  %v2918_v48 = vunpack.i.l.bf16 %v2917_v43  ;;  %v291_v7 = vld [vmem:[%s3705_s6] sm:$0xff] }
 0x17d   :  { %2750 = vmatprep.subr.bf16.mxu1 %v3083_v29  ;;  %2533 = vmatprep.mubr.msk.f32.mxu0 %vm3085_vm1, %v3086_v61  ;;  %v2775_v50 = vpack.c.bf16 %v2924_v44, %v2923_v46  ;;  %v1087_v46 = vld [vmem:[%s3706_s7 + $0x18] sm:$0xff] }
 0x17e   :  { %2522 = vmatprep.mubr.msk.f32.mxu1 %vm3085_vm1, %v3086_v61  ;;  %v2767_v31 = vpack.c.bf16 %v2919_v47, %v2918_v48  ;;  %v2932_v51 = vpop.permute.xlu1 %2931  ;;  %v2798_v47 = vpack.c.bf16 %v1087_v46, %v1086_v42 }
 0x17f   :  { %v2927_v52 = vpop.permute.xlu0 %2926  ;;  %v2934_v54 = vunpack.i.h.bf16 %v2932_v51  ;;  %v2933_v55 = vunpack.i.l.bf16 %v2932_v51 }
 0x180   :  { %v2929_v56 = vunpack.i.h.bf16 %v2927_v52  ;;  %v2928_v58 = vunpack.i.l.bf16 %v2927_v52 }
 0x181   :  { %v2787_v59 = vpack.c.bf16 %v2934_v54, %v2933_v55 }
 0x182   :  { %v2779_v60 = vpack.c.bf16 %v2929_v56, %v2928_v58  ;;  %v2942_v63 = vpop.permute.xlu1 %2941 }
 0x183   :  { %2761 = vmatpush3.bf16.xpose.msk.msra.mxu0 %vm3354_vm2, %v2759_v25  ;;  %v2937_v0 = vpop.permute.xlu0 %2936  ;;  %v2944_v1 = vunpack.i.h.bf16 %v2942_v63  ;;  %v2943_v2 = vunpack.i.l.bf16 %v2942_v63 }
 0x184   :  { %2753 = vmatpush3.bf16.xpose.msk.msra.mxu1 %vm3354_vm2, %v2751_v34  ;;  %2770 = vmatprep.subr.bf16.mxu0 %v3083_v29  ;;  %v2939_v3 = vunpack.i.h.bf16 %v2937_v0  ;;  %v2938_v4 = vunpack.i.l.bf16 %v2937_v0 }
 0x185   :  { %2762 = vmatprep.subr.bf16.mxu1 %v3083_v29  ;;  %v2791_v5 = vpack.c.bf16 %v2944_v1, %v2943_v2 }
 0x186   :  { %v2783_v6 = vpack.c.bf16 %v2939_v3, %v2938_v4 }
 0x18a   :  { %2534 = vmatmul.mubr.msk.f32.vlgmr.msra.gmra.mrb[10].mxu0 %vm65_vm0, %v3268_v41 }
 0x18b   :  { %2523 = vmatmul.mubr.msk.f32.vlgmr.msra.gmra.mrb[2].mxu1 %vm65_vm0, %v3275_v45  ;;  %2773 = vmatpush3.bf16.xpose.msk.msra.mxu0 %vm3354_vm2, %v2771_v27  ;;  %v1084_v27 = vld [vmem:[%s3706_s7] sm:$0xff] }
 0x18c   :  { %2765 = vmatpush3.bf16.xpose.msk.msra.mxu1 %vm3354_vm2, %v2763_v30  ;;  %2774 = vmatprep.subr.bf16.mxu0 %v3083_v29  ;;  %v1085_v30 = vld [vmem:[%s3706_s7 + $0x8] sm:$0xff]  ;;  %s3087_s7 = smov 64  }
 0x18d   :  { %2766 = vmatprep.subr.bf16.mxu1 %v3083_v29  ;;  %2555 = vmatprep.mubr.msk.f32.mxu0 %vm3085_vm1, %v3086_v61  ;;  %v2794_v44 = vpack.c.bf16 %v1085_v30, %v1084_v27 }
 0x18e   :  { %2544 = vmatprep.mubr.msk.f32.mxu1 %vm3085_vm1, %v3086_v61 }
 0x193   :  { %2777 = vmatpush3.bf16.xpose.msk.msra.mxu0 %vm3354_vm2, %v2775_v50 }
 0x194   :  { %2769 = vmatpush3.bf16.xpose.msk.msra.mxu1 %vm3354_vm2, %v2767_v31  ;;  %2786 = vmatprep.subr.bf16.mxu0 %v3083_v29 }
 0x195   :  { %2778 = vmatprep.subr.bf16.mxu1 %v3083_v29 }
 0x19a   :  { %2556 = vmatmul.mubr.msk.f32.vlgmr.msra.gmra.mrb[12].mxu0 %vm65_vm0, %v3282_v49 }
 0x19b   :  { %2545 = vmatmul.mubr.msk.f32.vlgmr.msra.gmra.mrb[4].mxu1 %vm65_vm0, %v3289_v53  ;;  %2789 = vmatpush3.bf16.xpose.msk.msra.mxu0 %vm3354_vm2, %v2787_v59 }
 0x19c   :  { %2781 = vmatpush3.bf16.xpose.msk.msra.mxu1 %vm3354_vm2, %v2779_v60  ;;  %2790 = vmatprep.subr.bf16.mxu0 %v3083_v29 }
 0x19d   :  { %2782 = vmatprep.subr.bf16.mxu1 %v3083_v29  ;;  %2577 = vmatprep.mubr.msk.f32.mxu0 %vm3085_vm1, %v3086_v61 }
 0x19e   :  { %2566 = vmatprep.mubr.msk.f32.mxu1 %vm3085_vm1, %v3086_v61 }
 0x1a3   :  { %2793 = vmatpush3.bf16.xpose.msk.msra.mxu0 %vm3354_vm2, %v2791_v5 }
 0x1a4   :  { %2785 = vmatpush3.bf16.xpose.msk.msra.mxu1 %vm3354_vm2, %v2783_v6 }
 0x1a5   :  { %2795 = vmatprep.subr.bf16.mxu1 %v2794_v44 }
 0x1aa   :  { %2578 = vmatmul.mubr.msk.f32.vlgmr.msra.gmra.mrb[14].mxu0 %vm65_vm0, %v3296_v57 }
 0x1ab   :  { %2567 = vmatmul.mubr.msk.f32.vlgmr.msra.gmra.mrb[6].mxu1 %vm65_vm0, %v3307_v62 }
 0x1ac   :  { %2797 = vmatpush3.bf16.msra.mxu1 %v2794_v44 }
 0x1ad   :  { %2799 = vmatprep.subr.bf16.mxu1 %v2798_v47 }
 0x1b0   :  { %2801 = vmatpush3.bf16.msra.mxu1 %v2798_v47 }
 0x1b1   :  { %2814 = vmatprep.subr.bf16.mxu1 %v3083_v29 }
 0x24d   :  { %v474_v9 = vpop.f32.mrb[8].mxu0 }
 0x24e   :  { %v475_v12 = vadd.f32 %v474_v9, %v291_v7  ;;  %v381_v17 = vpop.f32.mrb[0].mxu1  ;;  %v2513_v18 = vpop.f32.mrb[9].mxu0 }
 0x24f   :  { %v382_v21 = vadd.f32 %v381_v17, %v291_v7  ;;  %v2502_v22 = vpop.f32.mrb[1].mxu1 }
 0x250   :  { %v1039_v25 = vsel %vm65_vm0, %v475_v12, -inf }
 0x251   :  { %1040 = vmax.xlane.f32.xlu1 %v1039_v25  ;;  %v1036_v28 = vsel %vm65_vm0, %v382_v21, -inf }
 0x252   :  { %1037 = vmax.xlane.f32.xlu0 %v1036_v28 }
 0x25d   :  { %v660_v34 = vpop.f32.mrb[10].mxu0 }
 0x25e   :  { %v567_v35 = vpop.f32.mrb[2].mxu1  ;;  %v2535_v36 = vpop.f32.mrb[11].mxu0  ;;  %v661_v39 = vadd.f32 %v660_v34, %v291_v7 }
 0x25f   :  { %v568_v37 = vadd.f32 %v567_v35, %v291_v7  ;;  %v2524_v38 = vpop.f32.mrb[3].mxu1 }
 0x260   :  { %v1045_v43 = vsel %vm65_vm0, %v661_v39, -inf }
 0x261   :  { %v1042_v40 = vsel %vm65_vm0, %v568_v37, -inf }
 0x262   :  { %1043 = vmax.xlane.f32.xlu0 %v1042_v40 }
 0x266   :  { %1046 = vmax.xlane.f32.xlu0 %v1045_v43 }
 0x26d   :  { %v846_v48 = vpop.f32.mrb[12].mxu0 }
 0x26e   :  { %v847_v50 = vadd.f32 %v846_v48, %v291_v7  ;;  %v753_v31 = vpop.f32.mrb[4].mxu1  ;;  %v2557_v51 = vpop.f32.mrb[13].mxu0 }
 0x26f   :  { %v754_v52 = vadd.f32 %v753_v31, %v291_v7  ;;  %v2546_v54 = vpop.f32.mrb[5].mxu1 }
 0x270   :  { %v1051_v55 = vsel %vm65_vm0, %v847_v50, -inf }
 0x271   :  { %1052 = vmax.xlane.f32.xlu0 %v1051_v55  ;;  %v1048_v56 = vsel %vm65_vm0, %v754_v52, -inf }
 0x272   :  { %1049 = vmax.xlane.f32.xlu1 %v1048_v56 }
 0x27d   :  { %v1032_v58 = vpop.f32.mrb[14].mxu0 }
 0x27e   :  { %v1033_v59 = vadd.f32 %v1032_v58, %v291_v7  ;;  %v939_v60 = vpop.f32.mrb[6].mxu1  ;;  %v2579_v63 = vpop.f32.mrb[15].mxu0 }
 0x27f   :  { %v940_v0 = vadd.f32 %v939_v60, %v291_v7  ;;  %v2568_v1 = vpop.f32.mrb[7].mxu1 }
 0x280   :  { %v1057_v2 = vsel %vm65_vm0, %v1033_v59, -inf }
 0x281   :  { %1058 = vmax.xlane.f32.xlu0 %v1057_v2  ;;  %v1054_v3 = vsel %vm65_vm0, %v940_v0, -inf }
 0x282   :  { %1055 = vmax.xlane.f32.xlu1 %v1054_v3 }
 0x293   :  { %247 = vrot.lane.b32.xlu1 %v3180_v11, %s3087_s7 }
 0x297   :  { %249 = vrot.lane.b32.xlu0 %v3197_v15, %s3087_s7  ;;  %251 = vrot.lane.b32.xlu1 %v3175_v10, %s3087_s7 }
 0x29b   :  { %253 = vrot.lane.b32.xlu1 %v3190_v13, %s3087_s7 }
 0x2de   :  { %v1041_v4 = vpop.xlane.xlu1 %1040 }
 0x2df   :  { %v1061_v5 = vsub.f32 %v475_v12, %v1041_v4  ;;  %v1038_v6 = vpop.xlane.xlu0 %1037 }
 0x2e0   :  { %v1060_v7 = vsub.f32 %v382_v21, %v1038_v6 }
 0x2e1   :  { %v1070_v9 = vmul.f32 1.442695, %v1061_v5 }
 0x2e2   :  { %v1068_v17 = vmul.f32 1.442695, %v1060_v7 }
 0x2e4   :  { %3025 = vpow2.f32 %v1068_v17 }
 0x2e5   :  { %3027 = vpow2.f32 %v1070_v9 }
 0x2ee   :  { %v3464_v18 = vpop.eup %3025 }
 0x2ef   :  { %v3466_v11 = vpop.eup %3027  ;;  %v1044_v22 = vpop.xlane.xlu0 %1043  ;;  %2588 = vmatprep.mubr.msk.f32.mxu1 %vm65_vm0, %v3464_v18 }
 0x2f0   :  { %v1062_v10 = vsub.f32 %v568_v37, %v1044_v22  ;;  %2589 = vmatmul.mubr.msk.f32.vlgmr.msra.gmra.mrb[8].mxu1 %vm65_vm0, %v3466_v11 }
 0x2f2   :  { %v1072_v13 = vmul.f32 1.442695, %v1062_v10 }
 0x2f3   :  { %v1047_v15 = vpop.xlane.xlu0 %1046 }
 0x2f4   :  { %3029 = vpow2.f32 %v1072_v13  ;;  %v1063_v12 = vsub.f32 %v661_v39, %v1047_v15 }
 0x2f6   :  { %v1074_v21 = vmul.f32 1.442695, %v1063_v12 }
 0x2f8   :  { %3031 = vpow2.f32 %v1074_v21 }
 0x2fe   :  { %v3472_v25 = vpop.eup %3029  ;;  %v1053_v28 = vpop.xlane.xlu0 %1052 }
 0x2ff   :  { %v1065_v34 = vsub.f32 %v847_v50, %v1053_v28  ;;  %v1050_v35 = vpop.xlane.xlu1 %1049  ;;  %2591 = vmatprep.mubr.msk.f32.mxu1 %vm65_vm0, %v3472_v25 }
 0x300   :  { %v1064_v36 = vsub.f32 %v754_v52, %v1050_v35 }
 0x301   :  { %v1078_v38 = vmul.f32 1.442695, %v1065_v34 }
 0x302   :  { %v3476_v37 = vpop.eup %3031  ;;  %v1076_v40 = vmul.f32 1.442695, %v1064_v36 }
 0x303   :  { %2592 = vmatmul.mubr.msk.f32.gmra.mrb[10].mxu1 %vm65_vm0, %v3476_v37 }
 0x304   :  { %3033 = vpow2.f32 %v1076_v40 }
 0x305   :  { %3035 = vpow2.f32 %v1078_v38 }
 0x30e   :  { %v3480_v39 = vpop.eup %3033  ;;  %v1059_v27 = vpop.xlane.xlu0 %1058 }
 0x30f   :  { %v3482_v30 = vpop.eup %3035  ;;  %v1067_v42 = vsub.f32 %v1033_v59, %v1059_v27  ;;  %2594 = vmatprep.mubr.msk.f32.mxu1 %vm65_vm0, %v3480_v39  ;;  %v1056_v43 = vpop.xlane.xlu1 %1055 }
 0x310   :  { %v1066_v44 = vsub.f32 %v940_v0, %v1056_v43  ;;  %2595 = vmatmul.mubr.msk.f32.gmra.mrb[12].mxu1 %vm65_vm0, %v3482_v30 }
 0x311   :  { %v1082_v46 = vmul.f32 1.442695, %v1067_v42 }
 0x312   :  { %v1080_v47 = vmul.f32 1.442695, %v1066_v44  ;;  %v3488_v48 = vpop.permute.xlu0 %249 }
 0x313   :  { %v3490_v50 = vpop.permute.xlu1 %247  ;;  %v260_v31 = vmul.f32 %v3488_v48, %v3254_v33  ;;  %v264_v55 = vmul.f32 %v3252_v32, %v3488_v48  ;;  %v268_v60 = vmul.f32 %v3488_v48, %v3275_v45  ;;  %v276_v10 = vmul.f32 %v3488_v48, %v3289_v53 }
 0x314   :  { %3037 = vpow2.f32 %v1080_v47  ;;  %v259_v51 = vmul.f32 %v3490_v50, %v3254_v33  ;;  %v263_v54 = vmul.f32 %v3252_v32, %v3490_v50  ;;  %v267_v59 = vmul.f32 %v3490_v50, %v3275_v45 }
 0x315   :  { %3039 = vpow2.f32 %v1082_v46  ;;  %v275_v22 = vmul.f32 %v3490_v50, %v3289_v53  ;;  %v271_v15 = vmul.f32 %v3268_v41, %v3490_v50  ;;  %v283_v38 = vmul.f32 %v3490_v50, %v3307_v62 }
 0x316   :  { %v2945_v52 = vpack.i.bf16 %v260_v31, %v259_v51  ;;  %v2955_v58 = vpack.i.bf16 %v264_v55, %v263_v54  ;;  %v2965_v3 = vpack.i.bf16 %v268_v60, %v267_v59  ;;  %v284_v40 = vmul.f32 %v3488_v48, %v3307_v62 }
 0x317   :  { %v3500_v56 = vpop.permute.xlu1 %251  ;;  %v279_v42 = vmul.f32 %v3282_v49, %v3490_v50  ;;  %v280_v43 = vmul.f32 %v3282_v49, %v3488_v48  ;;  %v287_v54 = vmul.f32 %v3296_v57, %v3490_v50  ;;  %v288_v55 = vmul.f32 %v3296_v57, %v3488_v48  ;;  %v1233_v50 = vld [vmem:[%s3707_s8] sm:$0xf] }
 0x318   :  { %2946 = vrot.lane.b32.xlu0 %v2945_v52, %s3087_s7  ;;  %v261_v0 = vmul.f32 %v3500_v56, %v3254_v33  ;;  %v265_v9 = vmul.f32 %v3252_v32, %v3500_v56  ;;  %v277_v34 = vmul.f32 %v3500_v56, %v3289_v53  ;;  %v273_v35 = vmul.f32 %v3268_v41, %v3500_v56 }
 0x319   :  { %v2990_v44 = vpack.i.bf16 %v280_v43, %v279_v42  ;;  %v285_v47 = vmul.f32 %v3500_v56, %v3307_v62  ;;  %v281_v31 = vmul.f32 %v3282_v49, %v3500_v56  ;;  %2600 = vmatprep.subr.msk.mxu0 %vm1259_vm3, %v1233_v50 }
 0x31a   :  { %2601 = vmatpush3.msk.msra.mxu0 %vm1259_vm3, %v1233_v50 }
 0x31b   :  { %v254_v63 = vpop.permute.xlu1 %253  ;;  %2802 = vmatprep.subr.bf16.mxu0 %v3083_v29 }
 0x31c   :  { %2956 = vrot.lane.b32.xlu0 %v2955_v58, %s3087_s7  ;;  %v262_v1 = vmul.f32 %v254_v63, %v3254_v33  ;;  %v270_v5 = vmul.f32 %v254_v63, %v3275_v45  ;;  %v266_v7 = vmul.f32 %v3252_v32, %v254_v63  ;;  %v269_v33 = vmul.f32 %v3500_v56, %v3275_v45 }
 0x31d   :  { %v272_v45 = vmul.f32 %v3268_v41, %v3488_v48  ;;  %v2985_v32 = vpack.i.bf16 %v276_v10, %v275_v22  ;;  %v278_v12 = vmul.f32 %v254_v63, %v3289_v53  ;;  %v274_v28 = vmul.f32 %v3268_v41, %v254_v63 }
 0x31e   :  { %v3511_v2 = vpop.eup %3037  ;;  %v2950_v4 = vpack.i.bf16 %v262_v1, %v261_v0  ;;  %v2975_v17 = vpack.i.bf16 %v270_v5, %v269_v33  ;;  %v2960_v13 = vpack.i.bf16 %v266_v7, %v265_v9  ;;  %v3005_v53 = vpack.i.bf16 %v284_v40, %v283_v38 }
 0x31f   :  { %v3514_v6 = vpop.eup %3039  ;;  %2597 = vmatprep.mubr.msk.f32.mxu1 %vm65_vm0, %v3511_v2  ;;  %v2970_v21 = vpack.i.bf16 %v272_v45, %v271_v15  ;;  %v2995_v36 = vpack.i.bf16 %v278_v12, %v277_v34  ;;  %v2980_v27 = vpack.i.bf16 %v274_v28, %v273_v35  ;;  %v286_v41 = vmul.f32 %v254_v63, %v3307_v62 }
 0x320   :  { %2598 = vmatmul.mubr.msk.f32.gmra.mrb[14].mxu1 %vm65_vm0, %v3514_v6  ;;  %2966 = vrot.lane.b32.xlu0 %v2965_v3, %s3087_s7  ;;  %v282_v46 = vmul.f32 %v3282_v49, %v254_v63  ;;  %v3010_v58 = vpack.i.bf16 %v288_v55, %v287_v54  ;;  %v290_v62 = vmul.f32 %v3296_v57, %v254_v63 }
 0x321   :  { %2951 = vrot.lane.b32.xlu1 %v2950_v4, %s3087_s7  ;;  %2644 = vmatprep.mubr.msk.f32.mxu1 %vm3085_vm1, %v3086_v61  ;;  %v3015_v51 = vpack.i.bf16 %v286_v41, %v285_v47  ;;  %v289_v49 = vmul.f32 %v3296_v57, %v3500_v56 }
 0x322   :  { %v3000_v52 = vpack.i.bf16 %v282_v46, %v281_v31 }
 0x323   :  { %v3020_v59 = vpack.i.bf16 %v290_v62, %v289_v49 }
 0x324   :  { %2976 = vrot.lane.b32.xlu0 %v2975_v17, %s3087_s7 }
 0x325   :  { %2961 = vrot.lane.b32.xlu1 %v2960_v13, %s3087_s7 }
 0x328   :  { %2986 = vrot.lane.b32.xlu0 %v2985_v32, %s3087_s7 }
 0x329   :  { %2971 = vrot.lane.b32.xlu1 %v2970_v21, %s3087_s7 }
 0x32c   :  { %2996 = vrot.lane.b32.xlu0 %v2995_v36, %s3087_s7 }
 0x32d   :  { %2981 = vrot.lane.b32.xlu1 %v2980_v27, %s3087_s7 }
 0x330   :  { %3006 = vrot.lane.b32.xlu0 %v3005_v53, %s3087_s7 }
 0x331   :  { %2991 = vrot.lane.b32.xlu1 %v2990_v44, %s3087_s7 }
 0x334   :  { %3016 = vrot.lane.b32.xlu0 %v3015_v51, %s3087_s7 }
 0x335   :  { %3001 = vrot.lane.b32.xlu1 %v3000_v52, %s3087_s7 }
 0x339   :  { %3011 = vrot.lane.b32.xlu1 %v3010_v58, %s3087_s7 }
 0x33d   :  { %3021 = vrot.lane.b32.xlu1 %v3020_v59, %s3087_s7 }
 0x38a   :  { %v2947_v48 = vpop.permute.xlu0 %2946 }
 0x38b   :  { %v2949_v22 = vunpack.i.h.bf16 %v2947_v48  ;;  %v2948_v10 = vunpack.i.l.bf16 %v2947_v48 }
 0x38d   :  { %v2803_v32 = vpack.c.bf16 %v2949_v22, %v2948_v10 }
 0x38e   :  { %v3580_v60 = vpop.permute.xlu0 %2956 }
 0x38f   :  { %v2959_v62 = vunpack.i.h.bf16 %v3580_v60  ;;  %v2958_v49 = vunpack.i.l.bf16 %v3580_v60 }
 0x392   :  { %v2967_v63 = vpop.permute.xlu0 %2966 }
 0x393   :  { %v2969_v0 = vunpack.i.h.bf16 %v2967_v63  ;;  %v2968_v1 = vunpack.i.l.bf16 %v2967_v63  ;;  %v2952_v13 = vpop.permute.xlu1 %2951 }
 0x394   :  { %v2954_v12 = vunpack.i.h.bf16 %v2952_v13  ;;  %v2953_v21 = vunpack.i.l.bf16 %v2952_v13 }
 0x395   :  { %v2815_v3 = vpack.c.bf16 %v2969_v0, %v2968_v1  ;;  %v2809_v0 = vpack.c.bf16 %v2959_v62, %v2958_v49 }
 0x396   :  { %v2977_v57 = vpop.permute.xlu0 %2976  ;;  %v2806_v28 = vpack.c.bf16 %v2954_v12, %v2953_v21 }
 0x397   :  { %v2979_v56 = vunpack.i.h.bf16 %v2977_v57  ;;  %v2978_v4 = vunpack.i.l.bf16 %v2977_v57  ;;  %2816 = vmatpush3.bf16.msra.mxu1 %v2815_v3  ;;  %v2962_v58 = vpop.permute.xlu1 %2961 }
 0x398   :  { %2817 = vmatprep.subr.bf16.mxu1 %v3083_v29  ;;  %v2964_v1 = vunpack.i.h.bf16 %v2962_v58  ;;  %v2963_v3 = vunpack.i.l.bf16 %v2962_v58 }
 0x399   :  { %v2818_v5 = vpack.c.bf16 %v2979_v56, %v2978_v4 }
 0x39a   :  { %v2812_v56 = vpack.c.bf16 %v2964_v1, %v2963_v3 }
 0x39b   :  { %2819 = vmatpush3.bf16.msra.mxu1 %v2818_v5  ;;  %v2972_v59 = vpop.permute.xlu1 %2971 }
 0x39c   :  { %2826 = vmatprep.subr.bf16.mxu1 %v3083_v29  ;;  %v2974_v4 = vunpack.i.h.bf16 %v2972_v59  ;;  %v2973_v60 = vunpack.i.l.bf16 %v2972_v59 }
 0x39f   :  { %v2982_v57 = vpop.permute.xlu1 %2981 }
 0x3c3   :  { %v2590_v7 = vpop.f32.mrb[8].mxu1 }
 0x3c4   :  { %v1218_v33 = vmax.f32 %v2590_v7, 1e-30  ;;  %v1178_v9 = vpop.f32.mrb[9].mxu1  ;;  %v2984_v7 = vunpack.i.h.bf16 %v2982_v57 }
 0x3c5   :  { %v1217_v17 = vmax.f32 %v1178_v9, 1e-30  ;;  %v2992_v9 = vpop.permute.xlu1 %2991 }
 0x3c6   :  { %v2994_v10 = vunpack.i.h.bf16 %v2992_v9  ;;  %v2993_v13 = vunpack.i.l.bf16 %v2992_v9 }
 0x3c7   :  { %3041 = vrcp.f32 %v1217_v17  ;;  %v2987_v17 = vpop.permute.xlu0 %2986 }
 0x3c8   :  { %3043 = vrcp.f32 %v1218_v33  ;;  %v2983_v33 = vunpack.i.l.bf16 %v2982_v57 }
 0x3ca   :  { %v2824_v22 = vpack.c.bf16 %v2984_v7, %v2983_v33 }
 0x3d1   :  { %v3042_v15 = vpop.eup %3041 }
 0x3d2   :  { %v3044_v45 = vpop.eup %3043  ;;  %2602 = vmatprep.mubr.msk.f32.mxu0 %vm1234_vm4, %v3042_v15  ;;  %v2988_v15 = vunpack.i.l.bf16 %v2987_v17 }
 0x3d3   :  { %2603 = vmatmul.mubr.msk.f32.vlgmr.msra.gmra.mrb[16].mxu0 %vm1234_vm4, %v3044_v45  ;;  %v3002_v45 = vpop.permute.xlu1 %3001 }
 0x3d4   :  { %2804 = vmatpush3.bf16.msra.mxu0 %v2803_v32  ;;  %v2997_v32 = vpop.permute.xlu0 %2996 }
 0x3d5   :  { %2805 = vmatprep.subr.bf16.mxu0 %v3083_v29 }
 0x3d6   :  { %v2593_v34 = vpop.f32.mrb[10].mxu1 }
 0x3d7   :  { %v1220_v35 = vmax.f32 %v2593_v34, 1e-30  ;;  %v1188_v36 = vpop.f32.mrb[11].mxu1  ;;  %v2833_v34 = vpack.c.bf16 %v2994_v10, %v2993_v13 }
 0x3d8   :  { %v1219_v38 = vmax.f32 %v1188_v36, 1e-30  ;;  %2807 = vmatpush3.bf16.msra.mxu0 %v2806_v28  ;;  %v3003_v36 = vunpack.i.l.bf16 %v3002_v45 }
 0x3d9   :  { %2808 = vmatprep.subr.bf16.mxu0 %v3083_v29 }
 0x3da   :  { %3045 = vrcp.f32 %v1219_v38 }
 0x3db   :  { %3047 = vrcp.f32 %v1220_v35  ;;  %v3004_v35 = vunpack.i.h.bf16 %v3002_v45 }
 0x3e3   :  { %v2596_v40 = vpop.f32.mrb[12].mxu1 }
 0x3e4   :  { %v3046_v27 = vpop.eup %3045  ;;  %v1222_v42 = vmax.f32 %v2596_v40, 1e-30  ;;  %v1198_v43 = vpop.f32.mrb[13].mxu1 }
 0x3e5   :  { %v3048_v53 = vpop.eup %3047  ;;  %v1221_v41 = vmax.f32 %v1198_v43, 1e-30  ;;  %2605 = vmatprep.mubr.msk.f32.mxu0 %vm1234_vm4, %v3046_v27  ;;  %v2999_v27 = vunpack.i.h.bf16 %v2997_v32  ;;  %v2836_v43 = vpack.c.bf16 %v3004_v35, %v3003_v36 }
 0x3e6   :  { %2606 = vmatmul.mubr.msk.f32.gmra.mrb[18].mxu0 %vm1234_vm4, %v3048_v53  ;;  %v3012_v53 = vpop.permute.xlu1 %3011 }
 0x3e7   :  { %3049 = vrcp.f32 %v1221_v41  ;;  %v3014_v41 = vunpack.i.h.bf16 %v3012_v53 }
 0x3e8   :  { %3051 = vrcp.f32 %v1222_v42  ;;  %v2998_v42 = vunpack.i.l.bf16 %v2997_v32 }
 0x3f1   :  { %v3050_v44 = vpop.eup %3049 }
 0x3f2   :  { %v3052_v46 = vpop.eup %3051  ;;  %2608 = vmatprep.mubr.msk.f32.mxu0 %vm1234_vm4, %v3050_v44  ;;  %v3013_v44 = vunpack.i.l.bf16 %v3012_v53 }
 0x3f3   :  { %v2599_v47 = vpop.f32.mrb[14].mxu1  ;;  %2609 = vmatmul.mubr.msk.f32.gmra.mrb[20].mxu0 %vm1234_vm4, %v3052_v46 }
 0x3f4   :  { %v1224_v31 = vmax.f32 %v2599_v47, 1e-30  ;;  %v1208_v51 = vpop.f32.mrb[15].mxu1  ;;  %v2845_v58 = vpack.c.bf16 %v3014_v41, %v3013_v44 }
 0x3f5   :  { %v1223_v52 = vmax.f32 %v1208_v51, 1e-30 }
 0x3f7   :  { %3053 = vrcp.f32 %v1223_v52 }
 0x3f8   :  { %3055 = vrcp.f32 %v1224_v31  ;;  %v3022_v31 = vpop.permute.xlu1 %3021 }
 0x3f9   :  { %v3024_v62 = vunpack.i.h.bf16 %v3022_v31  ;;  %v3023_v49 = vunpack.i.l.bf16 %v3022_v31 }
 0x401   :  { %v3054_v54 = vpop.eup %3053 }
 0x402   :  { %v3056_v55 = vpop.eup %3055  ;;  %2611 = vmatprep.mubr.msk.f32.mxu0 %vm1234_vm4, %v3054_v54 }
 0x403   :  { %2612 = vmatmul.mubr.msk.f32.gmra.mrb[22].mxu0 %vm1234_vm4, %v3056_v55 }
 0x404   :  { %2622 = vmatprep.mubr.msk.f32.mxu0 %vm3085_vm1, %v3086_v61 }
 0x4a6   :  { %v2604_v50 = vpop.f32.mrb[16].mxu0 }
 0x4a7   :  { %v1329_v48 = vpop.f32.mrb[17].mxu0  ;;  %v1369_v5 = vmul.f32 %v3466_v11, %v2604_v50  ;;  %v2989_v11 = vunpack.i.h.bf16 %v2987_v17 }
 0x4a8   :  { %v1368_v63 = vmul.f32 %v3464_v18, %v1329_v48  ;;  %v2821_v18 = vpack.c.bf16 %v2974_v4, %v2973_v60 }
 0x4a9   :  { %v2827_v40 = vpack.c.bf16 %v2989_v11, %v2988_v15 }
 0x4aa   :  { %2623 = vmatmul.mubr.msk.f32.vlgmr.msra.gmra.mrb[24].mxu0 %vm65_vm0, %v1368_v63 }
 0x4ab   :  { %2810 = vmatpush3.bf16.msra.mxu0 %v2809_v0  ;;  %2633 = vmatprep.mubr.msk.f32.mxu0 %vm3085_vm1, %v3086_v61  ;;  %v2848_v0 = vpack.c.bf16 %v3024_v62, %v3023_v49 }
 0x4ac   :  { %2811 = vmatprep.subr.bf16.mxu0 %v3083_v29 }
 0x4af   :  { %2813 = vmatpush3.bf16.msra.mxu0 %v2812_v56 }
 0x4b0   :  { %2820 = vmatprep.subr.bf16.mxu0 %v3083_v29 }
 0x4b2   :  { %2634 = vmatmul.mubr.msk.f32.vlgmr.msra.gmra.mrb[26].mxu0 %vm65_vm0, %v1369_v5 }
 0x4b3   :  { %2822 = vmatpush3.bf16.msra.mxu0 %v2821_v18  ;;  %2655 = vmatprep.mubr.msk.f32.mxu0 %vm3085_vm1, %v3086_v61 }
 0x4b4   :  { %2823 = vmatprep.subr.bf16.mxu0 %v3083_v29 }
 0x4b7   :  { %2825 = vmatpush3.bf16.msra.mxu0 %v2824_v22 }
 0x4b8   :  { %2832 = vmatprep.subr.bf16.mxu0 %v3083_v29 }
 0x4b9   :  { %v2607_v12 = vpop.f32.mrb[18].mxu0 }
 0x4ba   :  { %v1371_v21 = vmul.f32 %v3476_v37, %v2607_v12  ;;  %v1339_v28 = vpop.f32.mrb[19].mxu0  ;;  %v2830_v37 = vpack.c.bf16 %v2999_v27, %v2998_v42 }
 0x4bb   :  { %v1370_v38 = vmul.f32 %v3472_v25, %v1339_v28  ;;  %v3007_v25 = vpop.permute.xlu0 %3006  ;;  %v2338_v28 = vld [vmem:[%s3703_s4] ss:$0 sm:$0xff] }
 0x4bc   :  { %2656 = vmatmul.mubr.msk.f32.vlgmr.msra.gmra.mrb[28].mxu0 %vm65_vm0, %v1371_v21  ;;  %v3009_v46 = vunpack.i.h.bf16 %v3007_v25  ;;  %v3008_v47 = vunpack.i.l.bf16 %v3007_v25 }
 0x4bd   :  { %2834 = vmatpush3.bf16.msra.mxu0 %v2833_v34  ;;  %2645 = vmatmul.mubr.msk.f32.vlgmr.msra.gmra.mrb[16].mxu1 %vm65_vm0, %v1370_v38 }
 0x4be   :  { %2828 = vmatpush3.bf16.msra.mxu1 %v2827_v40  ;;  %2835 = vmatprep.subr.bf16.mxu0 %v3083_v29  ;;  %v2839_v50 = vpack.c.bf16 %v3009_v46, %v3008_v47 }
 0x4bf   :  { %2829 = vmatprep.subr.bf16.mxu1 %v3083_v29  ;;  %2677 = vmatprep.mubr.msk.f32.mxu0 %vm3085_vm1, %v3086_v61  ;;  %v3017_v51 = vpop.permute.xlu0 %3016 }
 0x4c0   :  { %2666 = vmatprep.mubr.msk.f32.mxu1 %vm3085_vm1, %v3086_v61  ;;  %v3019_v48 = vunpack.i.h.bf16 %v3017_v51  ;;  %v3018_v63 = vunpack.i.l.bf16 %v3017_v51 }
 0x4c1   :  { %2837 = vmatpush3.bf16.msra.mxu0 %v2836_v43 }
 0x4c2   :  { %2831 = vmatpush3.bf16.msra.mxu1 %v2830_v37  ;;  %2844 = vmatprep.subr.bf16.mxu0 %v3083_v29 }
 0x4c3   :  { %2838 = vmatprep.subr.bf16.mxu1 %v3083_v29 }
 0x4c6   :  { %v2610_v52 = vpop.f32.mrb[20].mxu0 }
 0x4c7   :  { %v1373_v54 = vmul.f32 %v3482_v30, %v2610_v52  ;;  %v1349_v55 = vpop.f32.mrb[21].mxu0  ;;  %v2842_v30 = vpack.c.bf16 %v3019_v48, %v3018_v63 }
 0x4c8   :  { %v1372_v59 = vmul.f32 %v3480_v39, %v1349_v55 }
 0x4c9   :  { %2678 = vmatmul.mubr.msk.f32.vlgmr.msra.gmra.mrb[30].mxu0 %vm65_vm0, %v1373_v54 }
 0x4ca   :  { %2846 = vmatpush3.bf16.msra.mxu0 %v2845_v58  ;;  %2667 = vmatmul.mubr.msk.f32.vlgmr.msra.gmra.mrb[18].mxu1 %vm65_vm0, %v1372_v59 }
 0x4cb   :  { %2840 = vmatpush3.bf16.msra.mxu1 %v2839_v50  ;;  %2847 = vmatprep.subr.bf16.mxu0 %v3083_v29 }
 0x4cc   :  { %2841 = vmatprep.subr.bf16.mxu1 %v3083_v29  ;;  %2699 = vmatprep.mubr.msk.f32.mxu0 %vm3085_vm1, %v3086_v61  ;;  %v2088_v29 = vld [vmem:[%s3702_s3] sm:$0xff] }
 0x4cd   :  { %2688 = vmatprep.mubr.msk.f32.mxu1 %vm3085_vm1, %v3086_v61  ;;  %v2089_v61 = vld [vmem:[%s3702_s3 + $0x8] sm:$0xff] }
 0x4ce   :  { %2849 = vmatpush3.bf16.msra.mxu0 %v2848_v0  ;;  %v2850_v56 = vpack.c.bf16 %v2089_v61, %v2088_v29 }
 0x4cf   :  { %2843 = vmatpush3.bf16.msra.mxu1 %v2842_v30 }
 0x4d0   :  { %2851 = vmatprep.subr.bf16.mxu1 %v2850_v56 }
 0x4d6   :  { %v2613_v39 = vpop.f32.mrb[22].mxu0 }
 0x4d7   :  { %v1375_v1 = vmul.f32 %v3514_v6, %v2613_v39  ;;  %v1359_v3 = vpop.f32.mrb[23].mxu0  ;;  %v2090_v6 = vld [vmem:[%s3702_s3 + $0x10] sm:$0xff] }
 0x4d8   :  { %v1374_v57 = vmul.f32 %v3511_v2, %v1359_v3  ;;  %v2091_v2 = vld [vmem:[%s3702_s3 + $0x18] sm:$0xff] }
 0x4d9   :  { %2700 = vmatmul.mubr.msk.f32.vlgmr.msra.gmra.mrb[32].mxu0 %vm65_vm0, %v1375_v1  ;;  %v2854_v4 = vpack.c.bf16 %v2091_v2, %v2090_v6 }
 0x4da   :  { %2689 = vmatmul.mubr.msk.f32.vlgmr.msra.gmra.mrb[20].mxu1 %vm65_vm0, %v1374_v57 }
 0x4db   :  { %2853 = vmatpush3.bf16.msra.mxu1 %v2850_v56 }
 0x4dc   :  { %2855 = vmatprep.subr.bf16.mxu1 %v2854_v4 }
 0x4df   :  { %2857 = vmatpush3.bf16.msra.mxu1 %v2854_v4 }
 0x57d   :  { %v1461_v60 = vpop.f32.mrb[24].mxu0 }
 0x57e   :  { %v2624_v5 = vpop.f32.mrb[25].mxu0  ;;  %2710 = vmatprep.mubr.msk.f32.mxu1 %vm65_vm0, %v1461_v60 }
 0x585   :  { %v1550_v18 = vpop.f32.mrb[26].mxu0 }
 0x586   :  { %v2635_v7 = vpop.f32.mrb[27].mxu0  ;;  %2711 = vmatmul.mubr.msk.f32.vlgmr.msra.gmra.mrb[22].mxu1 %vm65_vm0, %v1550_v18 }
 0x58f   :  { %v1728_v33 = vpop.f32.mrb[28].mxu0 }
 0x590   :  { %v1639_v9 = vpop.f32.mrb[16].mxu1  ;;  %v2657_v17 = vpop.f32.mrb[29].mxu0 }
 0x591   :  { %v2646_v22 = vpop.f32.mrb[17].mxu1  ;;  %2713 = vmatprep.mubr.msk.f32.mxu1 %vm65_vm0, %v1639_v9 }
 0x592   :  { %2714 = vmatmul.mubr.msk.f32.gmra.mrb[24].mxu1 %vm65_vm0, %v1728_v33 }
 0x59c   :  { %v1906_v10 = vpop.f32.mrb[30].mxu0 }
 0x59d   :  { %v1817_v13 = vpop.f32.mrb[18].mxu1  ;;  %v2679_v11 = vpop.f32.mrb[31].mxu0 }
 0x59e   :  { %v2668_v15 = vpop.f32.mrb[19].mxu1  ;;  %2716 = vmatprep.mubr.msk.f32.mxu1 %vm65_vm0, %v1817_v13 }
 0x59f   :  { %2717 = vmatmul.mubr.msk.f32.gmra.mrb[26].mxu1 %vm65_vm0, %v1906_v10 }
 0x5ac   :  { %v2084_v45 = vpop.f32.mrb[32].mxu0 }
 0x5ad   :  { %v1995_v32 = vpop.f32.mrb[20].mxu1  ;;  %v2701_v12 = vpop.f32.mrb[33].mxu0 }
 0x5ae   :  { %v2690_v21 = vpop.f32.mrb[21].mxu1  ;;  %2719 = vmatprep.mubr.msk.f32.mxu1 %vm65_vm0, %v1995_v32 }
 0x5af   :  { %2720 = vmatmul.mubr.msk.f32.gmra.mrb[28].mxu1 %vm65_vm0, %v2084_v45 }
 0x659   :  { %v2712_v34 = vpop.f32.mrb[22].mxu1 }
 0x65a   :  { %v2195_v35 = vadd.f32 %v2712_v34, %v2338_v28  ;;  %v2189_v36 = vpop.f32.mrb[23].mxu1 }
 0x65b   :  { %v2190_v38 = vadd.f32 %v2338_v28, %v2189_v36 }
 0x65c   :  { %v2229_v40 = vmax.f32 %v2195_v35, 0.0 }
 0x65d   :  { %v2228_v27 = vmax.f32 %v2190_v38, 0.0 }
 0x65e   :  { %v2237_v42 = vadd.f32 %v2229_v40, %v1550_v18 }
 0x65f   :  { %v2236_v43 = vadd.f32 %v2228_v27, %v1461_v60 }
 0x660   :  { %v2245_v53 = vadd.f32 %v2237_v42, %v3192_v14 }
 0x661   :  { %v2244_v37 = vadd.f32 %v2236_v43, %v3165_v8 }
 0x662   :  { %2253 = vst.msk [vmem:[%s3708_s9 + $0x8] sm:$0xff] %vm65_vm0, %v2245_v53 }
 0x663   :  { %2252 = vst.msk [vmem:[%s3708_s9] sm:$0xff] %vm65_vm0, %v2244_v37 }
 0x665   :  { %v2715_v25 = vpop.f32.mrb[24].mxu1 }
 0x666   :  { %v2205_v41 = vadd.f32 %v2715_v25, %v2338_v28  ;;  %v2199_v44 = vpop.f32.mrb[25].mxu1 }
 0x667   :  { %v2200_v46 = vadd.f32 %v2338_v28, %v2199_v44 }
 0x668   :  { %v2231_v47 = vmax.f32 %v2205_v41, 0.0 }
 0x669   :  { %v2230_v31 = vmax.f32 %v2200_v46, 0.0 }
 0x66a   :  { %v2239_v51 = vadd.f32 %v2231_v47, %v1728_v33 }
 0x66b   :  { %v2238_v14 = vadd.f32 %v2230_v31, %v1639_v9 }
 0x66c   :  { %v2247_v8 = vadd.f32 %v2239_v51, %v3211_v19 }
 0x66d   :  { %v2246_v52 = vadd.f32 %v2238_v14, %v3199_v16 }
 0x66e   :  { %2255 = vst.msk [vmem:[%s3708_s9 + $0x18] sm:$0xff] %vm65_vm0, %v2247_v8 }
 0x66f   :  { %2254 = vst.msk [vmem:[%s3708_s9 + $0x10] sm:$0xff] %vm65_vm0, %v2246_v52 }
 0x672   :  { %v2718_v54 = vpop.f32.mrb[26].mxu1 }
 0x673   :  { %v2215_v55 = vadd.f32 %v2718_v54, %v2338_v28  ;;  %v2209_v58 = vpop.f32.mrb[27].mxu1 }
 0x674   :  { %v2210_v62 = vadd.f32 %v2338_v28, %v2209_v58 }
 0x675   :  { %v2233_v49 = vmax.f32 %v2215_v55, 0.0 }
 0x676   :  { %v2232_v59 = vmax.f32 %v2210_v62, 0.0 }
 0x677   :  { %v2241_v50 = vadd.f32 %v2233_v49, %v1906_v10 }
 0x678   :  { %v2240_v19 = vadd.f32 %v2232_v59, %v1817_v13 }
 0x679   :  { %v2249_v16 = vadd.f32 %v2241_v50, %v3225_v23 }
 0x67a   :  { %v2248_v48 = vadd.f32 %v2240_v19, %v3215_v20 }
 0x67b   :  { %2257 = vst.msk [vmem:[%s3708_s9 + $0x28] sm:$0xff] %vm65_vm0, %v2249_v16 }
 0x67c   :  { %2256 = vst.msk [vmem:[%s3708_s9 + $0x20] sm:$0xff] %vm65_vm0, %v2248_v48 }
 0x682   :  { %v2721_v63 = vpop.f32.mrb[28].mxu1 }
 0x683   :  { %v2225_v0 = vadd.f32 %v2721_v63, %v2338_v28  ;;  %v2219_v30 = vpop.f32.mrb[29].mxu1 }
 0x684   :  { %v2220_v39 = vadd.f32 %v2338_v28, %v2219_v30 }
 0x685   :  { %v2235_v1 = vmax.f32 %v2225_v0, 0.0 }
 0x686   :  { %v2234_v3 = vmax.f32 %v2220_v39, 0.0 }
 0x687   :  { %v2243_v57 = vadd.f32 %v2235_v1, %v2084_v45 }
 0x688   :  { %v2242_v23 = vadd.f32 %v2234_v3, %v1995_v32 }
 0x689   :  { %v2251_v20 = vadd.f32 %v2243_v57, %v3236_v26 }
 0x68a   :  { %v2250_v29 = vadd.f32 %v2242_v23, %v3229_v24 }
 0x68b   :  { %2259 = vst.msk [vmem:[%s3708_s9 + $0x38] sm:$0xff] %vm65_vm0, %v2251_v20 }
 0x68c   :  { %2258 = vst.msk [vmem:[%s3708_s9 + $0x30] sm:$0xff] %vm65_vm0, %v2250_v29 }
 0x68d   :  { %2264 = vsyncpa [#allocation3], 1 }

</bundles_post_ra>
